<compile_context>
chip_gen: v7x
topology: tpu7x:2x2x1
jax: 0.10.0
libtpu: 0.0.40
codegen_flags: <defaults>
</compile_context>

<pallas_src>
import jax
import jax.numpy as jnp
from jax.experimental import pallas as pl
from jax.experimental.pallas import tpu as pltpu


def _classifier_homo_kernel(x_ref, wt_ref, b_ref, o_ref):
    """One batch tile: out = relu(x) @ W^T + b.

    x_ref  : [tb, K]  f32 activations (batch tile)
    wt_ref : [K, Np]  pre-transposed, zero-padded weights (f32 or bf16)
    b_ref  : [1, Np]  zero-padded bias, f32
    o_ref  : [tb, Np] output (lane-dense, Np multiple of 128)
    """
    x = jnp.maximum(x_ref[...], 0.0)           # nn.ReLU() in f32 (v5e-friendly)
    x = x.astype(wt_ref.dtype)                 # no-op for f32; bf16 MXU on v6e/v7x
    acc = jnp.dot(x, wt_ref[...], preferred_element_type=jnp.float32)
    o_ref[...] = (acc + b_ref[...]).astype(o_ref.dtype)


def prepare_classifier_homo_params(weight, bias, *, lane_pad=128,
                                   param_dtype=jnp.float32):
    """One-time parameter prep (do this at init, NOT per forward call).

    weight: [N, K] (PyTorch nn.Linear layout), bias: [N].
    Returns (wt_padded [K, Np], bias_padded [1, Np]) with Np = ceil(N/128)*128.
    Padded columns of W and padded bias entries are zero, so padded logits are
    exactly zero and inert.
    """
    N, K = weight.shape
    Np = ((N + lane_pad - 1) // lane_pad) * lane_pad
    wt = weight.T.astype(param_dtype)                              # [K, N]
    wt_padded = jnp.zeros((K, Np), param_dtype).at[:, :N].set(wt)
    b_padded = jnp.zeros((1, Np), jnp.float32).at[:, :N].set(
        bias.astype(jnp.float32))
    return wt_padded, b_padded


def classifier_homo_forward(x, wt_padded, bias_padded, num_classes, *,
                            block_b=512):
    """x: [B, K] f32. wt_padded/bias_padded from prepare_classifier_homo_params."""
    B, K = x.shape
    K_w, Np = wt_padded.shape
    assert K == K_w, f"feature dim mismatch: x has {K}, weight has {K_w}"

    # Batch tile size: multiple of 8 sublanes, no larger than needed.
    tb = min(block_b, ((B + 7) // 8) * 8)
    tb = ((tb + 7) // 8) * 8
    Bp = ((B + tb - 1) // tb) * tb             # pad batch to a tile multiple
    if Bp != B:
        x = jnp.zeros((Bp, K), x.dtype).at[:B, :].set(x)

    grid = (Bp // tb,)
    out_padded = pl.pallas_call(
        _classifier_homo_kernel,
        out_shape=jax.ShapeDtypeStruct((Bp, Np), x.dtype),
        grid_spec=pltpu.PrefetchScalarGridSpec(
            num_scalar_prefetch=0,
            grid=grid,
            in_specs=[
                pl.BlockSpec((tb, K), lambda i: (i, 0)),    # x batch tile
                pl.BlockSpec((K, Np), lambda i: (0, 0)),    # W^T (resident)
                pl.BlockSpec((1, Np), lambda i: (0, 0)),    # bias (resident)
            ],
            out_specs=pl.BlockSpec((tb, Np), lambda i: (i, 0)),
        ),
        compiler_params=pltpu.CompilerParams(
            dimension_semantics=("parallel",)),
    )(x, wt_padded, bias_padded)

    return out_padded[:B, :num_classes]


if __name__ == "__main__":
    # Module fixes in_features = 4096; keep batch / num_classes small.
    B = 8
    K = 4096
    NUM_CLASSES = 16

    key = jax.random.PRNGKey(0)
    kx, kw, kb = jax.random.split(key, 3)

    x = jax.random.normal(kx, (B, K), dtype=jnp.float32)
    # Deterministic synthetic parameters (nn.Linear(4096, num_classes) shapes).
    weight = jax.random.normal(kw, (NUM_CLASSES, K), dtype=jnp.float32) * 0.02
    bias = jax.random.normal(kb, (NUM_CLASSES,), dtype=jnp.float32) * 0.1

    # Reference (pure JAX) — same semantics as the torch forward.
    ref = jnp.maximum(x, 0.0) @ weight.T + bias

    # f32-weight path (exact check).
    wt_f32, b_f32 = prepare_classifier_homo_params(weight, bias,
                                                   param_dtype=jnp.float32)
    out = classifier_homo_forward(x, wt_f32, b_f32, NUM_CLASSES)
    out = jax.block_until_ready(out)
    assert out.shape == (B, NUM_CLASSES)
    assert jnp.allclose(out, ref, atol=1e-4, rtol=1e-4)

    # bf16-weight path (v6e/v7x HBM-traffic optimization), f32 accumulation.
    wt_bf16, b_bf16 = prepare_classifier_homo_params(weight, bias,
                                                     param_dtype=jnp.bfloat16)
    out_bf16 = classifier_homo_forward(x, wt_bf16, b_bf16, NUM_CLASSES)
    out_bf16 = jax.block_until_ready(out_bf16)
    assert out_bf16.shape == (B, NUM_CLASSES)
    assert jnp.allclose(out_bf16, ref, atol=5e-2, rtol=5e-2)

    # Odd (non-multiple-of-8) batch exercises the padding path.
    x_odd = x[:5]
    out_odd = classifier_homo_forward(x_odd, wt_f32, b_f32, NUM_CLASSES)
    out_odd = jax.block_until_ready(out_odd)
    assert out_odd.shape == (5, NUM_CLASSES)
    assert jnp.allclose(out_odd, ref[:5], atol=1e-4, rtol=1e-4)

    print("KERNEL_OK")
</pallas_src>

<mosaic_0001>
module attributes {stable_mosaic.version = 11 : i64} {
  func.func @_classifier_homo_kernel(%arg0: i32, %arg1: memref<8x4096xf32, #tpu.memory_space<vmem>>, %arg2: memref<4096x128xf32, #tpu.memory_space<vmem>>, %arg3: memref<1x128xf32, #tpu.memory_space<vmem>>, %arg4: memref<8x128xf32, #tpu.memory_space<vmem>>) attributes {dimension_semantics = [#tpu.dimension_semantics<parallel>], iteration_bounds = array<i64: 1>, scalar_prefetch = 0 : i64, scratch_operands = 0 : i64, tpu.core_type = #tpu.core_type<tc>, window_params = [{transform_indices = @transform_0, window_bounds = array<i64: 8, 4096>}, {pipeline_mode = #tpu.pipeline_mode<synchronous>, transform_indices = @transform_1, window_bounds = array<i64: 4096, 128>}, {pipeline_mode = #tpu.pipeline_mode<synchronous>, transform_indices = @transform_2, window_bounds = array<i64: 1, 128>}, {transform_indices = @transform_3, window_bounds = array<i64: 8, 128>}]} {
    %c0 = arith.constant 0 : index
    %c0_0 = arith.constant 0 : index
    %0 = vector.load %arg1[%c0, %c0_0] : memref<8x4096xf32, #tpu.memory_space<vmem>>, vector<8x4096xf32>
    %cst = arith.constant 0.000000e+00 : f32
    %1 = vector.broadcast %cst : f32 to vector<8x4096xf32>
    %2 = arith.maximumf %0, %1 : vector<8x4096xf32>
    %c0_1 = arith.constant 0 : index
    %c0_2 = arith.constant 0 : index
    %3 = vector.load %arg2[%c0_1, %c0_2] : memref<4096x128xf32, #tpu.memory_space<vmem>>, vector<4096x128xf32>
    %cst_3 = arith.constant dense<0.000000e+00> : vector<8x128xf32>
    %4 = tpu.matmul %2, %3, %cst_3 {dimension_numbers = #tpu.dot_dimension_numbers<[1], [0], [0], [1], [0, 0, 1, 1], [], []>} : vector<8x4096xf32>, vector<4096x128xf32>, vector<8x128xf32> -> vector<8x128xf32>
    %c0_4 = arith.constant 0 : index
    %c0_5 = arith.constant 0 : index
    %5 = vector.load %arg3[%c0_4, %c0_5] : memref<1x128xf32, #tpu.memory_space<vmem>>, vector<1x128xf32>
    %6 = vector.broadcast %5 : vector<1x128xf32> to vector<8x128xf32>
    %7 = arith.addf %4, %6 : vector<8x128xf32>
    %c0_6 = arith.constant 0 : index
    %c0_7 = arith.constant 0 : index
    %8 = vector.load %arg4[%c0_6, %c0_7] : memref<8x128xf32, #tpu.memory_space<vmem>>, vector<8x128xf32>
    tpu.vector_store %arg4[%c0_6, %c0_7], %7 {strides = array<i32>} : memref<8x128xf32, #tpu.memory_space<vmem>>, vector<8x128xf32>,
    return
  }
  func.func @transform_0(%arg0: i32) -> (i32, i32) {
    %c0_i32 = arith.constant 0 : i32
    %c0_i32_0 = arith.constant 0 : i32
    return %arg0, %c0_i32 : i32, i32
  }
  func.func @transform_1(%arg0: i32) -> (i32, i32) {
    %c0_i32 = arith.constant 0 : i32
    %c0_i32_0 = arith.constant 0 : i32
    %c0_i32_1 = arith.constant 0 : i32
    return %c0_i32, %c0_i32_0 : i32, i32
  }
  func.func @transform_2(%arg0: i32) -> (i32, i32) {
    %c0_i32 = arith.constant 0 : i32
    %c0_i32_0 = arith.constant 0 : i32
    %c0_i32_1 = arith.constant 0 : i32
    return %c0_i32, %c0_i32_0 : i32, i32
  }
  func.func @transform_3(%arg0: i32) -> (i32, i32) {
    %c0_i32 = arith.constant 0 : i32
    %c0_i32_0 = arith.constant 0 : i32
    return %arg0, %c0_i32 : i32, i32
  }
}

</mosaic_0001>

<bundles_post_ra>
// kernel: tpu_custom_call.1
= control target key start
LH: loop header
LB: loop body
LE: loop exit
PB: predicated region body
PF: predicated region fallthrough
CT: control target
= control target key end

     0   :  { %8 = vsyncpa [#allocation3], 0  ;;  %s3019_s0 = inlined_call_operand.hbm [shape: f32[8,4096], index: 0, kind: input, shape index: {}]   ;;  %s3020_s1 = inlined_call_operand.hbm [shape: f32[4096,128], index: 1, kind: input, shape index: {}]   ;;  %s3021_s2 = inlined_call_operand.hbm [shape: f32[1,128], index: 2, kind: input, shape index: {}]   ;;  %s3022_s3 = inlined_call_operand.hbm [shape: f32[8,128], index: 3, kind: output, shape index: {}]  }
   0x1   :  { %9 = vsyncpa [#allocation6], 0 }
   0x2   :  { %10 = vsyncpa [#allocation4], 0  ;;  %s2945_s12 = smov [#allocation5]   ;;  %s2851_s16 = scalar_lea.hbm %s3020_s1, 65536 }
   0x3   :  { %s26_s13 = sshll.u32 %s2945_s12, 4  ;;  %p2852_p0 = scmp.ne.s32.totalorder %s3020_s1, %s2851_s16  ;;  %s27_s13 = int_to_ptr.vmem [resolvable:$true] %s26_s13 }
   0x4   :  { %p2855_p1 = scmp.lt.u32.totalorder %s2851_s16, %s3020_s1 }
   0x6   :  { %p2857_p2 = pnand %p2855_p1, %p2852_p0 }
   0x8   :  { %2860 = shalt.err (!%p2857_p2)
}
   0x9   :  { %s2861_s21 = scalar_lea.vmem %s27_s13, 65536  ;;  %p2866_p4 = scmp.lt.s32.totalorder %s27_s13, %s27_s13 }
   0xa   :  { %p2862_p3 = scmp.ne.s32.totalorder %s27_s13, %s2861_s21  ;;  %p2867_p5 = scmp.lt.s32.totalorder %s2861_s21, %s2861_s21 }
   0xc   :  { %p2868_p6 = por %p2867_p5, %p2866_p4 }
   0xe   :  { %p2869_p7 = pnand %p2868_p6, %p2862_p3 }
  0x10   :  { %2872 = shalt.err (!%p2869_p7)
}
  0x11   :  { %s2946_s22 = smov 128   ;;  %s2947_s23 = smov 8  }
  0x12   :  { %32 = dma.hbm_to_vmem [thread:$0]  %s3020_s1, 65536, %s27_s13, [#allocation6], %s2946_s22, %s2946_s22, %s2947_s23  }
  0x13   :  { %s2948_s26 = smov [#allocation2]   ;;  %s2949_s28 = smov [#allocation7]  }
  0x14   :  { %s17_s27 = sshll.u32 %s2948_s26, 4  ;;  %s39_s29 = sshll.u32 %s2949_s28, 4  ;;  %s18_s27 = int_to_ptr.vmem [resolvable:$true] %s17_s27  ;;  %s40_s29 = int_to_ptr.vmem [resolvable:$true] %s39_s29 }
  0x15   :  { %s2873_s5 = scalar_lea.hbm %s3019_s0, 4096 }
  0x16   :  { %p2874_p8 = scmp.ne.s32.totalorder %s3019_s0, %s2873_s5  ;;  %p2877_p9 = scmp.lt.u32.totalorder %s2873_s5, %s3019_s0 }
  0x18   :  { %p2879_p10 = pnand %p2877_p9, %p2874_p8 }
  0x1a   :  { %2882 = shalt.err (!%p2879_p10)
}
  0x1b   :  { %s2883_s1 = scalar_lea.vmem %s18_s27, 4096  ;;  %p2888_p12 = scmp.lt.s32.totalorder %s18_s27, %s18_s27 }
  0x1c   :  { %p2884_p11 = scmp.ne.s32.totalorder %s18_s27, %s2883_s1  ;;  %p2889_p13 = scmp.lt.s32.totalorder %s2883_s1, %s2883_s1 }
  0x1e   :  { %p2890_p0 = por %p2889_p13, %p2888_p12 }
  0x20   :  { %p2891_p1 = pnand %p2890_p0, %p2884_p11 }
  0x22   :  { %2894 = shalt.err (!%p2891_p1)
}
  0x23   :  { %20 = dma.hbm_to_vmem [thread:$0]  %s3019_s0, 4096, %s18_s27, [#allocation3]  }
  0x24   :  { %s2895_s14 = scalar_lea.hbm %s3021_s2, 16 }
  0x25   :  { %p2896_p2 = scmp.ne.s32.totalorder %s3021_s2, %s2895_s14  ;;  %p2899_p3 = scmp.lt.u32.totalorder %s2895_s14, %s3021_s2 }
  0x27   :  { %p2901_p4 = pnand %p2899_p3, %p2896_p2 }
  0x29   :  { %2904 = shalt.err (!%p2901_p4)
}
  0x2a   :  { %s2905_s19 = scalar_lea.vmem %s40_s29, 16  ;;  %s2909_s20 = scalar_lea.vmem %s40_s29, 32 }
  0x2b   :  { %p2906_p5 = scmp.ne.s32.totalorder %s40_s29, %s2905_s19  ;;  %p2910_p6 = scmp.lt.s32.totalorder %s40_s29, %s40_s29 }
  0x2c   :  { %p2911_p7 = scmp.lt.s32.totalorder %s2909_s20, %s2905_s19 }
  0x2e   :  { %p2912_p8 = por %p2911_p7, %p2910_p6 }
  0x30   :  { %p2913_p9 = pnand %p2912_p8, %p2906_p5 }
  0x32   :  { %2916 = shalt.err (!%p2913_p9)
}
  0x33   :  { %42 = dma.hbm_to_vmem [thread:$0]  %s3021_s2, 16, %s40_s29, [#allocation6]  }
  0x34   :  { %2939 = dma.done.wait [#allocation3], 4096  }
  0x35   :  { %2940 = vsyncadd [#allocation3], 4294963200 }
  0x36   :  { %2941 = dma.done.wait [#allocation6], 65552  }
  0x37   :  { %2942 = vsyncadd [#allocation6], 4294901744  ;;  %v132_v0 = vld [vmem:[#allocation5 + $0x80] sm:$0xff]  ;;  %v133_v1 = vld [vmem:[#allocation5 + $0x88] sm:$0xff]  ;;  %s2950_s2 = smov [#allocation8]  }
  0x38   :  { %v116_v2 = vld [vmem:[#allocation5] sm:$0xff]  ;;  %v2333_v3 = vpack.c.bf16 %v133_v1, %v132_v0  ;;  %v117_v4 = vld [vmem:[#allocation5 + $0x8] sm:$0xff]  ;;  %v134_v11 = vld [vmem:[#allocation5 + $0x90] sm:$0xff]  ;;  %s1762_s22 = sshll.u32 %s2950_s2, 4  ;;  %s1763_s22 = int_to_ptr.vmem [resolvable:$true] %s1762_s22 }
  0x39   :  { %v164_v5 = vld [vmem:[#allocation5 + $0x180] sm:$0xff]  ;;  %v165_v6 = vld [vmem:[#allocation5 + $0x188] sm:$0xff]  ;;  %v2335_v7 = vpack.c.bf16 %v117_v4, %v116_v2  ;;  %v135_v13 = vld [vmem:[#allocation5 + $0x98] sm:$0xff]  ;;  %s2917_s23 = scalar_lea.vmem %s1763_s22, 128  ;;  %p2922_p11 = scmp.lt.s32.totalorder %s1763_s22, %s1763_s22 }
  0x3a   :  { %v2365_v8 = vpack.c.bf16 %v165_v6, %v164_v5  ;;  %v148_v9 = vld [vmem:[#allocation5 + $0x100] sm:$0xff]  ;;  %v149_v10 = vld [vmem:[#allocation5 + $0x108] sm:$0xff]  ;;  %2334 = vmatprep.subr.bf16.mxu0 %v2333_v3  ;;  %v118_v14 = vld [vmem:[#allocation5 + $0x10] sm:$0xff]  ;;  %v2337_v16 = vpack.c.bf16 %v135_v13, %v134_v11  ;;  %p2918_p10 = scmp.ne.s32.totalorder %s1763_s22, %s2917_s23  ;;  %p2923_p12 = scmp.lt.s32.totalorder %s2917_s23, %s2917_s23 }
  0x3b   :  { %v2367_v12 = vpack.c.bf16 %v149_v10, %v148_v9  ;;  %v119_v15 = vld [vmem:[#allocation5 + $0x18] sm:$0xff]  ;;  %2336 = vmatpush3.bf16.msra.mxu0 %v2335_v7  ;;  %v166_v18 = vld [vmem:[#allocation5 + $0x190] sm:$0xff]  ;;  %v136_v23 = vld [vmem:[#allocation5 + $0xa0] sm:$0xff] }
  0x3c   :  { %2366 = vmatprep.subr.bf16.mxu1 %v2365_v8  ;;  %v2339_v17 = vpack.c.bf16 %v119_v15, %v118_v14  ;;  %v167_v19 = vld [vmem:[#allocation5 + $0x198] sm:$0xff]  ;;  %v150_v20 = vld [vmem:[#allocation5 + $0x110] sm:$0xff]  ;;  %v137_v24 = vld [vmem:[#allocation5 + $0xa8] sm:$0xff]  ;;  %2338 = vmatprep.subr.bf16.mxu0 %v2337_v16  ;;  %p2924_p13 = por %p2923_p12, %p2922_p11 }
  0x3d   :  { %2368 = vmatpush3.bf16.msra.mxu1 %v2367_v12  ;;  %v2369_v21 = vpack.c.bf16 %v167_v19, %v166_v18  ;;  %v151_v22 = vld [vmem:[#allocation5 + $0x118] sm:$0xff]  ;;  %v2341_v26 = vpack.c.bf16 %v137_v24, %v136_v23  ;;  %v120_v27 = vld [vmem:[#allocation5 + $0x20] sm:$0xff]  ;;  %v121_v28 = vld [vmem:[#allocation5 + $0x28] sm:$0xff] }
  0x3e   :  { %v2371_v25 = vpack.c.bf16 %v151_v22, %v150_v20  ;;  %v168_v29 = vld [vmem:[#allocation5 + $0x1a0] sm:$0xff]  ;;  %v169_v30 = vld [vmem:[#allocation5 + $0x1a8] sm:$0xff]  ;;  %v2343_v33 = vpack.c.bf16 %v121_v28, %v120_v27  ;;  %v138_v35 = vld [vmem:[#allocation5 + $0xb0] sm:$0xff]  ;;  %p2925_p0 = pnand %p2924_p13, %p2918_p10 }
  0x3f   :  { %2370 = vmatprep.subr.bf16.mxu1 %v2369_v21  ;;  %v152_v31 = vld [vmem:[#allocation5 + $0x120] sm:$0xff]  ;;  %v153_v32 = vld [vmem:[#allocation5 + $0x128] sm:$0xff]  ;;  %2340 = vmatpush3.bf16.msra.mxu0 %v2339_v17  ;;  %v2373_v34 = vpack.c.bf16 %v169_v30, %v168_v29  ;;  %v139_v36 = vld [vmem:[#allocation5 + $0xb8] sm:$0xff] }
  0x40   :  { %v122_v37 = vld [vmem:[#allocation5 + $0x30] sm:$0xff]  ;;  %2342 = vmatprep.subr.bf16.mxu0 %v2341_v26  ;;  %v2375_v38 = vpack.c.bf16 %v153_v32, %v152_v31  ;;  %v2345_v39 = vpack.c.bf16 %v139_v36, %v138_v35  ;;  %v123_v40 = vld [vmem:[#allocation5 + $0x38] sm:$0xff]  ;;  %v140_v46 = vld [vmem:[#allocation5 + $0xc0] sm:$0xff] }
  0x41   :  { %2372 = vmatpush3.bf16.msra.mxu1 %v2371_v25  ;;  %v170_v41 = vld [vmem:[#allocation5 + $0x1b0] sm:$0xff]  ;;  %v171_v42 = vld [vmem:[#allocation5 + $0x1b8] sm:$0xff]  ;;  %v141_v47 = vld [vmem:[#allocation5 + $0xc8] sm:$0xff]  ;;  %v2347_v48 = vpack.c.bf16 %v123_v40, %v122_v37 }
  0x42   :  { %2374 = vmatprep.subr.bf16.mxu1 %v2373_v34  ;;  %v2377_v43 = vpack.c.bf16 %v171_v42, %v170_v41  ;;  %v154_v44 = vld [vmem:[#allocation5 + $0x130] sm:$0xff]  ;;  %v155_v45 = vld [vmem:[#allocation5 + $0x138] sm:$0xff]  ;;  %v172_v49 = vld [vmem:[#allocation5 + $0x1c0] sm:$0xff]  ;;  %v2349_v52 = vpack.c.bf16 %v141_v47, %v140_v46 }
  0x43   :  { %2344 = vmatpush3.bf16.msra.mxu0 %v2343_v33  ;;  %v173_v50 = vld [vmem:[#allocation5 + $0x1c8] sm:$0xff]  ;;  %v2379_v51 = vpack.c.bf16 %v155_v45, %v154_v44  ;;  %v124_v53 = vld [vmem:[#allocation5 + $0x40] sm:$0xff]  ;;  %v142_v58 = vld [vmem:[#allocation5 + $0xd0] sm:$0xff] }
  0x44   :  { %2346 = vmatprep.subr.bf16.mxu0 %v2345_v39  ;;  %v125_v54 = vld [vmem:[#allocation5 + $0x48] sm:$0xff]  ;;  %v156_v55 = vld [vmem:[#allocation5 + $0x140] sm:$0xff]  ;;  %v2381_v56 = vpack.c.bf16 %v173_v50, %v172_v49  ;;  %v143_v59 = vld [vmem:[#allocation5 + $0xd8] sm:$0xff] }
  0x45   :  { %2376 = vmatpush3.bf16.msra.mxu1 %v2375_v38  ;;  %v157_v57 = vld [vmem:[#allocation5 + $0x148] sm:$0xff]  ;;  %v174_v60 = vld [vmem:[#allocation5 + $0x1d0] sm:$0xff]  ;;  %v175_v61 = vld [vmem:[#allocation5 + $0x1d8] sm:$0xff]  ;;  %v2351_v62 = vpack.c.bf16 %v125_v54, %v124_v53  ;;  %v2353_v0 = vpack.c.bf16 %v143_v59, %v142_v58 }
  0x46   :  { %2378 = vmatprep.subr.bf16.mxu1 %v2377_v43  ;;  %v2383_v63 = vpack.c.bf16 %v157_v57, %v156_v55  ;;  %v126_v1 = vld [vmem:[#allocation5 + $0x50] sm:$0xff]  ;;  %v127_v2 = vld [vmem:[#allocation5 + $0x58] sm:$0xff]  ;;  %v2385_v4 = vpack.c.bf16 %v175_v61, %v174_v60  ;;  %v144_v6 = vld [vmem:[#allocation5 + $0xe0] sm:$0xff] }
  0x47   :  { %2348 = vmatpush3.bf16.msra.mxu0 %v2347_v48  ;;  %v158_v3 = vld [vmem:[#allocation5 + $0x150] sm:$0xff]  ;;  %v159_v5 = vld [vmem:[#allocation5 + $0x158] sm:$0xff]  ;;  %v145_v7 = vld [vmem:[#allocation5 + $0xe8] sm:$0xff]  ;;  %v2355_v10 = vpack.c.bf16 %v127_v2, %v126_v1 }
  0x48   :  { %2350 = vmatprep.subr.bf16.mxu0 %v2349_v52  ;;  %v176_v8 = vld [vmem:[#allocation5 + $0x1e0] sm:$0xff]  ;;  %v177_v9 = vld [vmem:[#allocation5 + $0x1e8] sm:$0xff]  ;;  %v2387_v13 = vpack.c.bf16 %v159_v5, %v158_v3  ;;  %v2357_v14 = vpack.c.bf16 %v145_v7, %v144_v6  ;;  %v146_v19 = vld [vmem:[#allocation5 + $0xf0] sm:$0xff] }
  0x49   :  { %2380 = vmatpush3.bf16.msra.mxu1 %v2379_v51  ;;  %v128_v11 = vld [vmem:[#allocation5 + $0x60] sm:$0xff]  ;;  %v129_v12 = vld [vmem:[#allocation5 + $0x68] sm:$0xff]  ;;  %v2389_v18 = vpack.c.bf16 %v177_v9, %v176_v8  ;;  %v147_v20 = vld [vmem:[#allocation5 + $0xf8] sm:$0xff] }
  0x4a   :  { %2382 = vmatprep.subr.bf16.mxu1 %v2381_v56  ;;  %v160_v15 = vld [vmem:[#allocation5 + $0x160] sm:$0xff]  ;;  %v161_v16 = vld [vmem:[#allocation5 + $0x168] sm:$0xff]  ;;  %v55_v22 = vld [vmem:[#allocation2 + $0x18] sm:$0xff]  ;;  %v2359_v26 = vpack.c.bf16 %v129_v12, %v128_v11  ;;  %v2361_v28 = vpack.c.bf16 %v147_v20, %v146_v19 }
  0x4b   :  { %2352 = vmatpush3.bf16.msra.mxu0 %v2351_v62  ;;  %v53_v17 = vld [vmem:[#allocation2 + $0x8] sm:$0xff]  ;;  %v178_v23 = vld [vmem:[#allocation5 + $0x1f0] sm:$0xff]  ;;  %v179_v24 = vld [vmem:[#allocation5 + $0x1f8] sm:$0xff]  ;;  %v87_v25 = vmax.f32 %v55_v22, 0.0  ;;  %v2391_v27 = vpack.c.bf16 %v161_v16, %v160_v15 }
  0x4c   :  { %2354 = vmatprep.subr.bf16.mxu0 %v2353_v0  ;;  %v85_v21 = vmax.f32 %v53_v17, 0.0  ;;  %v130_v29 = vld [vmem:[#allocation5 + $0x70] sm:$0xff]  ;;  %v131_v30 = vld [vmem:[#allocation5 + $0x78] sm:$0xff]  ;;  %v2393_v32 = vpack.c.bf16 %v179_v24, %v178_v23  ;;  %v196_v34 = vld [vmem:[#allocation5 + $0x280] sm:$0xff] }
  0x4d   :  { %2384 = vmatpush3.bf16.msra.mxu1 %v2383_v63  ;;  %v162_v31 = vld [vmem:[#allocation5 + $0x170] sm:$0xff]  ;;  %v163_v33 = vld [vmem:[#allocation5 + $0x178] sm:$0xff]  ;;  %v197_v35 = vld [vmem:[#allocation5 + $0x288] sm:$0xff]  ;;  %769 = vmatprep.mubr.f32.mxu1 %v87_v25  ;;  %v2363_v38 = vpack.c.bf16 %v131_v30, %v130_v29 }
  0x4e   :  { %2386 = vmatprep.subr.bf16.mxu1 %v2385_v4  ;;  %699 = vmatprep.mubr.f32.mxu0 %v85_v21  ;;  %v228_v36 = vld [vmem:[#allocation5 + $0x380] sm:$0xff]  ;;  %v229_v37 = vld [vmem:[#allocation5 + $0x388] sm:$0xff]  ;;  %v2395_v41 = vpack.c.bf16 %v163_v33, %v162_v31  ;;  %v2397_v42 = vpack.c.bf16 %v197_v35, %v196_v34  ;;  %v54_v44 = vld [vmem:[#allocation2 + $0x10] sm:$0xff] }
  0x4f   :  { %2356 = vmatpush3.bf16.msra.mxu0 %v2355_v10  ;;  %v52_v39 = vld [vmem:[#allocation2] sm:$0xff]  ;;  %v181_v43 = vld [vmem:[#allocation5 + $0x208] sm:$0xff]  ;;  %v2429_v46 = vpack.c.bf16 %v229_v37, %v228_v36  ;;  %v198_v48 = vld [vmem:[#allocation5 + $0x290] sm:$0xff]  ;;  %v86_v54 = vmax.f32 %v54_v44, 0.0 }
  0x50   :  { %2358 = vmatprep.subr.bf16.mxu0 %v2357_v14  ;;  %v180_v40 = vld [vmem:[#allocation5 + $0x200] sm:$0xff]  ;;  %v213_v47 = vld [vmem:[#allocation5 + $0x308] sm:$0xff]  ;;  %v199_v49 = vld [vmem:[#allocation5 + $0x298] sm:$0xff]  ;;  %v84_v50 = vmax.f32 %v52_v39, 0.0 }
  0x51   :  { %2388 = vmatpush3.bf16.msra.mxu1 %v2387_v13  ;;  %v212_v45 = vld [vmem:[#allocation5 + $0x300] sm:$0xff]  ;;  %v230_v51 = vld [vmem:[#allocation5 + $0x390] sm:$0xff]  ;;  %v231_v52 = vld [vmem:[#allocation5 + $0x398] sm:$0xff]  ;;  %v2399_v53 = vpack.c.bf16 %v181_v43, %v180_v40  ;;  %v2401_v56 = vpack.c.bf16 %v199_v49, %v198_v48 }
  0x52   :  { %2390 = vmatprep.subr.bf16.mxu1 %v2389_v18  ;;  %v2431_v55 = vpack.c.bf16 %v213_v47, %v212_v45  ;;  %v182_v57 = vld [vmem:[#allocation5 + $0x210] sm:$0xff]  ;;  %v183_v58 = vld [vmem:[#allocation5 + $0x218] sm:$0xff]  ;;  %v2433_v60 = vpack.c.bf16 %v231_v52, %v230_v51  ;;  %v200_v62 = vld [vmem:[#allocation5 + $0x2a0] sm:$0xff] }
  0x53   :  { %2360 = vmatpush3.bf16.msra.mxu0 %v2359_v26  ;;  %v214_v59 = vld [vmem:[#allocation5 + $0x310] sm:$0xff]  ;;  %v215_v61 = vld [vmem:[#allocation5 + $0x318] sm:$0xff]  ;;  %v201_v63 = vld [vmem:[#allocation5 + $0x2a8] sm:$0xff]  ;;  %v2403_v2 = vpack.c.bf16 %v183_v58, %v182_v57 }
  0x54   :  { %2362 = vmatprep.subr.bf16.mxu0 %v2361_v28  ;;  %v232_v0 = vld [vmem:[#allocation5 + $0x3a0] sm:$0xff]  ;;  %v233_v1 = vld [vmem:[#allocation5 + $0x3a8] sm:$0xff]  ;;  %v2435_v3 = vpack.c.bf16 %v215_v61, %v214_v59  ;;  %v2405_v4 = vpack.c.bf16 %v201_v63, %v200_v62  ;;  %v202_v10 = vld [vmem:[#allocation5 + $0x2b0] sm:$0xff] }
  0x55   :  { %2392 = vmatpush3.bf16.msra.mxu1 %v2391_v27  ;;  %v184_v5 = vld [vmem:[#allocation5 + $0x220] sm:$0xff]  ;;  %v185_v6 = vld [vmem:[#allocation5 + $0x228] sm:$0xff]  ;;  %v2437_v8 = vpack.c.bf16 %v233_v1, %v232_v0  ;;  %v203_v11 = vld [vmem:[#allocation5 + $0x2b8] sm:$0xff] }
  0x56   :  { %2394 = vmatprep.subr.bf16.mxu1 %v2393_v32  ;;  %v216_v7 = vld [vmem:[#allocation5 + $0x320] sm:$0xff]  ;;  %v217_v9 = vld [vmem:[#allocation5 + $0x328] sm:$0xff]  ;;  %v234_v12 = vld [vmem:[#allocation5 + $0x3b0] sm:$0xff]  ;;  %v2407_v14 = vpack.c.bf16 %v185_v6, %v184_v5  ;;  %v2409_v16 = vpack.c.bf16 %v203_v11, %v202_v10 }
  0x57   :  { %2364 = vmatpush3.bf16.msra.mxu0 %v2363_v38  ;;  %v235_v13 = vld [vmem:[#allocation5 + $0x3b8] sm:$0xff]  ;;  %v2439_v15 = vpack.c.bf16 %v217_v9, %v216_v7  ;;  %v186_v17 = vld [vmem:[#allocation5 + $0x230] sm:$0xff]  ;;  %v204_v22 = vld [vmem:[#allocation5 + $0x2c0] sm:$0xff] }
  0x58   :  { %2398 = vmatprep.subr.bf16.mxu0 %v2397_v42  ;;  %v187_v18 = vld [vmem:[#allocation5 + $0x238] sm:$0xff]  ;;  %v218_v19 = vld [vmem:[#allocation5 + $0x330] sm:$0xff]  ;;  %v2441_v20 = vpack.c.bf16 %v235_v13, %v234_v12  ;;  %v205_v23 = vld [vmem:[#allocation5 + $0x2c8] sm:$0xff] }
  0x59   :  { %2396 = vmatpush3.bf16.msra.mxu1 %v2395_v41  ;;  %v219_v21 = vld [vmem:[#allocation5 + $0x338] sm:$0xff]  ;;  %v236_v24 = vld [vmem:[#allocation5 + $0x3c0] sm:$0xff]  ;;  %v237_v25 = vld [vmem:[#allocation5 + $0x3c8] sm:$0xff]  ;;  %v2411_v26 = vpack.c.bf16 %v187_v18, %v186_v17  ;;  %v2413_v30 = vpack.c.bf16 %v205_v23, %v204_v22 }
  0x5a   :  { %2430 = vmatprep.subr.bf16.mxu1 %v2429_v46  ;;  %700 = vmatmul.mubr.f32.vlgmr.msra.gmra.mrb[0].mxu0 %v84_v50  ;;  %v188_v27 = vld [vmem:[#allocation5 + $0x240] sm:$0xff]  ;;  %v57_v28 = vld [vmem:[#allocation2 + $0x28] sm:$0xff]  ;;  %v2443_v29 = vpack.c.bf16 %v219_v21, %v218_v19  ;;  %v59_v34 = vld [vmem:[#allocation2 + $0x38] sm:$0xff]  ;;  %v2445_v35 = vpack.c.bf16 %v237_v25, %v236_v24 }
  0x5b   :  { %2400 = vmatpush3.bf16.msra.mxu0 %v2399_v53  ;;  %v189_v31 = vld [vmem:[#allocation5 + $0x248] sm:$0xff]  ;;  %v220_v32 = vld [vmem:[#allocation5 + $0x340] sm:$0xff]  ;;  %v89_v33 = vmax.f32 %v57_v28, 0.0  ;;  %v206_v37 = vld [vmem:[#allocation5 + $0x2d0] sm:$0xff]  ;;  %v91_v39 = vmax.f32 %v59_v34, 0.0 }
  0x5c   :  { %770 = vmatmul.mubr.f32.vlgmr.msra.gmra.mrb[0].mxu1 %v86_v54  ;;  %2402 = vmatprep.subr.bf16.mxu0 %v2401_v56  ;;  %v221_v36 = vld [vmem:[#allocation5 + $0x348] sm:$0xff]  ;;  %v207_v38 = vld [vmem:[#allocation5 + $0x2d8] sm:$0xff]  ;;  %v238_v40 = vld [vmem:[#allocation5 + $0x3d0] sm:$0xff]  ;;  %v2415_v42 = vpack.c.bf16 %v189_v31, %v188_v27 }
  0x5d   :  { %2432 = vmatpush3.bf16.msra.mxu1 %v2431_v55  ;;  %v239_v41 = vld [vmem:[#allocation5 + $0x3d8] sm:$0xff]  ;;  %839 = vmatprep.mubr.f32.mxu0 %v89_v33  ;;  %v2447_v43 = vpack.c.bf16 %v221_v36, %v220_v32  ;;  %v2417_v44 = vpack.c.bf16 %v207_v38, %v206_v37  ;;  %v190_v45 = vld [vmem:[#allocation5 + $0x250] sm:$0xff]  ;;  %v208_v50 = vld [vmem:[#allocation5 + $0x2e0] sm:$0xff] }
  0x5e   :  { %2434 = vmatprep.subr.bf16.mxu1 %v2433_v60  ;;  %909 = vmatprep.mubr.f32.mxu1 %v91_v39  ;;  %v191_v46 = vld [vmem:[#allocation5 + $0x258] sm:$0xff]  ;;  %v222_v47 = vld [vmem:[#allocation5 + $0x350] sm:$0xff]  ;;  %v2449_v48 = vpack.c.bf16 %v239_v41, %v238_v40  ;;  %v209_v51 = vld [vmem:[#allocation5 + $0x2e8] sm:$0xff] }
  0x5f   :  { %2404 = vmatpush3.bf16.msra.mxu0 %v2403_v2  ;;  %v223_v49 = vld [vmem:[#allocation5 + $0x358] sm:$0xff]  ;;  %v240_v52 = vld [vmem:[#allocation5 + $0x3e0] sm:$0xff]  ;;  %v241_v53 = vld [vmem:[#allocation5 + $0x3e8] sm:$0xff]  ;;  %v2419_v54 = vpack.c.bf16 %v191_v46, %v190_v45  ;;  %v2421_v56 = vpack.c.bf16 %v209_v51, %v208_v50 }
  0x60   :  { %2406 = vmatprep.subr.bf16.mxu0 %v2405_v4  ;;  %v2451_v55 = vpack.c.bf16 %v223_v49, %v222_v47  ;;  %v192_v57 = vld [vmem:[#allocation5 + $0x260] sm:$0xff]  ;;  %v193_v58 = vld [vmem:[#allocation5 + $0x268] sm:$0xff]  ;;  %v2453_v60 = vpack.c.bf16 %v241_v53, %v240_v52  ;;  %v210_v62 = vld [vmem:[#allocation5 + $0x2f0] sm:$0xff] }
  0x61   :  { %2436 = vmatpush3.bf16.msra.mxu1 %v2435_v3  ;;  %v224_v59 = vld [vmem:[#allocation5 + $0x360] sm:$0xff]  ;;  %v225_v61 = vld [vmem:[#allocation5 + $0x368] sm:$0xff]  ;;  %v211_v63 = vld [vmem:[#allocation5 + $0x2f8] sm:$0xff]  ;;  %v2423_v2 = vpack.c.bf16 %v193_v58, %v192_v57 }
  0x62   :  { %2438 = vmatprep.subr.bf16.mxu1 %v2437_v8  ;;  %v242_v0 = vld [vmem:[#allocation5 + $0x3f0] sm:$0xff]  ;;  %v243_v1 = vld [vmem:[#allocation5 + $0x3f8] sm:$0xff]  ;;  %v2455_v3 = vpack.c.bf16 %v225_v61, %v224_v59  ;;  %v2425_v4 = vpack.c.bf16 %v211_v63, %v210_v62  ;;  %v260_v10 = vld [vmem:[#allocation5 + $0x480] sm:$0xff] }
  0x63   :  { %2408 = vmatpush3.bf16.msra.mxu0 %v2407_v14  ;;  %v194_v5 = vld [vmem:[#allocation5 + $0x270] sm:$0xff]  ;;  %v195_v6 = vld [vmem:[#allocation5 + $0x278] sm:$0xff]  ;;  %v2457_v8 = vpack.c.bf16 %v243_v1, %v242_v0  ;;  %v261_v11 = vld [vmem:[#allocation5 + $0x488] sm:$0xff] }
  0x64   :  { %2410 = vmatprep.subr.bf16.mxu0 %v2409_v16  ;;  %v226_v7 = vld [vmem:[#allocation5 + $0x370] sm:$0xff]  ;;  %v227_v9 = vld [vmem:[#allocation5 + $0x378] sm:$0xff]  ;;  %v292_v12 = vld [vmem:[#allocation5 + $0x580] sm:$0xff]  ;;  %v2427_v14 = vpack.c.bf16 %v195_v6, %v194_v5  ;;  %v2461_v18 = vpack.c.bf16 %v261_v11, %v260_v10 }
  0x65   :  { %2440 = vmatpush3.bf16.msra.mxu1 %v2439_v15  ;;  %v293_v13 = vld [vmem:[#allocation5 + $0x588] sm:$0xff]  ;;  %v56_v15 = vld [vmem:[#allocation2 + $0x20] sm:$0xff]  ;;  %v2459_v17 = vpack.c.bf16 %v227_v9, %v226_v7  ;;  %v262_v24 = vld [vmem:[#allocation5 + $0x490] sm:$0xff] }
  0x66   :  { %2442 = vmatprep.subr.bf16.mxu1 %v2441_v20  ;;  %v244_v16 = vld [vmem:[#allocation5 + $0x400] sm:$0xff]  ;;  %v245_v19 = vld [vmem:[#allocation5 + $0x408] sm:$0xff]  ;;  %v58_v20 = vld [vmem:[#allocation2 + $0x30] sm:$0xff]  ;;  %v2493_v22 = vpack.c.bf16 %v293_v13, %v292_v12 }
  0x67   :  { %2412 = vmatpush3.bf16.msra.mxu0 %v2411_v26  ;;  %v276_v21 = vld [vmem:[#allocation5 + $0x500] sm:$0xff]  ;;  %v277_v23 = vld [vmem:[#allocation5 + $0x508] sm:$0xff]  ;;  %v263_v25 = vld [vmem:[#allocation5 + $0x498] sm:$0xff]  ;;  %v88_v26 = vmax.f32 %v56_v15, 0.0 }
  0x68   :  { %2414 = vmatprep.subr.bf16.mxu0 %v2413_v30  ;;  %v294_v27 = vld [vmem:[#allocation5 + $0x590] sm:$0xff]  ;;  %v295_v28 = vld [vmem:[#allocation5 + $0x598] sm:$0xff]  ;;  %v90_v30 = vmax.f32 %v58_v20, 0.0  ;;  %v2495_v32 = vpack.c.bf16 %v277_v23, %v276_v21  ;;  %v2465_v33 = vpack.c.bf16 %v263_v25, %v262_v24  ;;  %v264_v38 = vld [vmem:[#allocation5 + $0x4a0] sm:$0xff] }
  0x69   :  { %2444 = vmatpush3.bf16.msra.mxu1 %v2443_v29  ;;  %v2463_v29 = vpack.c.bf16 %v245_v19, %v244_v16  ;;  %v246_v31 = vld [vmem:[#allocation5 + $0x410] sm:$0xff]  ;;  %v247_v34 = vld [vmem:[#allocation5 + $0x418] sm:$0xff]  ;;  %v2497_v37 = vpack.c.bf16 %v295_v28, %v294_v27  ;;  %v265_v39 = vld [vmem:[#allocation5 + $0x4a8] sm:$0xff] }
  0x6a   :  { %2446 = vmatprep.subr.bf16.mxu1 %v2445_v35  ;;  %v278_v35 = vld [vmem:[#allocation5 + $0x510] sm:$0xff]  ;;  %v279_v36 = vld [vmem:[#allocation5 + $0x518] sm:$0xff]  ;;  %v61_v40 = vld [vmem:[#allocation2 + $0x48] sm:$0xff]  ;;  %v2469_v47 = vpack.c.bf16 %v265_v39, %v264_v38 }
  0x6b   :  { %2416 = vmatpush3.bf16.msra.mxu0 %v2415_v42  ;;  %v296_v41 = vld [vmem:[#allocation5 + $0x5a0] sm:$0xff]  ;;  %v297_v42 = vld [vmem:[#allocation5 + $0x5a8] sm:$0xff]  ;;  %v63_v45 = vld [vmem:[#allocation2 + $0x58] sm:$0xff]  ;;  %v2499_v46 = vpack.c.bf16 %v279_v36, %v278_v35 }
  0x6c   :  { %2418 = vmatprep.subr.bf16.mxu0 %v2417_v44  ;;  %v2467_v44 = vpack.c.bf16 %v247_v34, %v246_v31  ;;  %v249_v49 = vld [vmem:[#allocation5 + $0x428] sm:$0xff]  ;;  %v280_v50 = vld [vmem:[#allocation5 + $0x520] sm:$0xff]  ;;  %v95_v51 = vmax.f32 %v63_v45, 0.0  ;;  %v2501_v52 = vpack.c.bf16 %v297_v42, %v296_v41  ;;  %v299_v57 = vld [vmem:[#allocation5 + $0x5b8] sm:$0xff] }
  0x6d   :  { %2448 = vmatpush3.bf16.msra.mxu1 %v2447_v43  ;;  %v93_v43 = vmax.f32 %v61_v40, 0.0  ;;  %v281_v53 = vld [vmem:[#allocation5 + $0x528] sm:$0xff]  ;;  %v250_v61 = vld [vmem:[#allocation5 + $0x430] sm:$0xff]  ;;  %v251_v62 = vld [vmem:[#allocation5 + $0x438] sm:$0xff] }
  0x6e   :  { %2450 = vmatprep.subr.bf16.mxu1 %v2449_v48  ;;  %v248_v48 = vld [vmem:[#allocation5 + $0x420] sm:$0xff]  ;;  %v2503_v59 = vpack.c.bf16 %v281_v53, %v280_v50  ;;  %v282_v63 = vld [vmem:[#allocation5 + $0x530] sm:$0xff]  ;;  %v283_v1 = vld [vmem:[#allocation5 + $0x538] sm:$0xff]  ;;  %v2475_v6 = vpack.c.bf16 %v251_v62, %v250_v61 }
  0x6f   :  { %2420 = vmatpush3.bf16.msra.mxu0 %v2419_v54  ;;  %v266_v54 = vld [vmem:[#allocation5 + $0x4b0] sm:$0xff]  ;;  %v2471_v58 = vpack.c.bf16 %v249_v49, %v248_v48  ;;  %v301_v5 = vld [vmem:[#allocation5 + $0x5c8] sm:$0xff]  ;;  %v2507_v7 = vpack.c.bf16 %v283_v1, %v282_v63  ;;  %v252_v9 = vld [vmem:[#allocation5 + $0x440] sm:$0xff] }
  0x70   :  { %2422 = vmatprep.subr.bf16.mxu0 %v2421_v56  ;;  %v298_v56 = vld [vmem:[#allocation5 + $0x5b0] sm:$0xff]  ;;  %v253_v10 = vld [vmem:[#allocation5 + $0x448] sm:$0xff]  ;;  %v284_v11 = vld [vmem:[#allocation5 + $0x540] sm:$0xff] }
  0x71   :  { %2452 = vmatpush3.bf16.msra.mxu1 %v2451_v55  ;;  %v267_v55 = vld [vmem:[#allocation5 + $0x4b8] sm:$0xff]  ;;  %v2505_v0 = vpack.c.bf16 %v299_v57, %v298_v56  ;;  %v285_v13 = vld [vmem:[#allocation5 + $0x548] sm:$0xff]  ;;  %v302_v16 = vld [vmem:[#allocation5 + $0x5d0] sm:$0xff] }
  0x72   :  { %2454 = vmatprep.subr.bf16.mxu1 %v2453_v60  ;;  %v2473_v60 = vpack.c.bf16 %v267_v55, %v266_v54  ;;  %v271_v15 = vld [vmem:[#allocation5 + $0x4d8] sm:$0xff]  ;;  %v2511_v19 = vpack.c.bf16 %v285_v13, %v284_v11  ;;  %v254_v21 = vld [vmem:[#allocation5 + $0x450] sm:$0xff]  ;;  %v273_v27 = vld [vmem:[#allocation5 + $0x4e8] sm:$0xff] }
  0x73   :  { %2424 = vmatpush3.bf16.msra.mxu0 %v2423_v2  ;;  %v268_v2 = vld [vmem:[#allocation5 + $0x4c0] sm:$0xff]  ;;  %v286_v23 = vld [vmem:[#allocation5 + $0x550] sm:$0xff]  ;;  %v287_v25 = vld [vmem:[#allocation5 + $0x558] sm:$0xff] }
  0x74   :  { %2426 = vmatprep.subr.bf16.mxu0 %v2425_v4  ;;  %v300_v4 = vld [vmem:[#allocation5 + $0x5c0] sm:$0xff]  ;;  %v2515_v31 = vpack.c.bf16 %v287_v25, %v286_v23  ;;  %v257_v34 = vld [vmem:[#allocation5 + $0x468] sm:$0xff]  ;;  %v274_v38 = vld [vmem:[#allocation5 + $0x4f0] sm:$0xff] }
  0x75   :  { %2456 = vmatpush3.bf16.msra.mxu1 %v2455_v3  ;;  %v269_v3 = vld [vmem:[#allocation5 + $0x4c8] sm:$0xff]  ;;  %v2509_v12 = vpack.c.bf16 %v301_v5, %v300_v4  ;;  %v304_v28 = vld [vmem:[#allocation5 + $0x5e0] sm:$0xff]  ;;  %v275_v39 = vld [vmem:[#allocation5 + $0x4f8] sm:$0xff] }
  0x76   :  { %2458 = vmatprep.subr.bf16.mxu1 %v2457_v8  ;;  %v2477_v8 = vpack.c.bf16 %v269_v3, %v268_v2  ;;  %v288_v35 = vld [vmem:[#allocation5 + $0x560] sm:$0xff]  ;;  %v306_v40 = vld [vmem:[#allocation5 + $0x5f0] sm:$0xff]  ;;  %v307_v41 = vld [vmem:[#allocation5 + $0x5f8] sm:$0xff] }
  0x77   :  { %2428 = vmatpush3.bf16.msra.mxu0 %v2427_v14  ;;  %v270_v14 = vld [vmem:[#allocation5 + $0x4d0] sm:$0xff]  ;;  %v2521_v48 = vpack.c.bf16 %v307_v41, %v306_v40  ;;  %v291_v49 = vld [vmem:[#allocation5 + $0x578] sm:$0xff]  ;;  %v324_v50 = vld [vmem:[#allocation5 + $0x680] sm:$0xff] }
  0x78   :  { %2462 = vmatprep.subr.bf16.mxu0 %v2461_v18  ;;  %v2479_v18 = vpack.c.bf16 %v253_v10, %v252_v9  ;;  %v2481_v20 = vpack.c.bf16 %v271_v15, %v270_v14  ;;  %v258_v45 = vld [vmem:[#allocation5 + $0x470] sm:$0xff]  ;;  %v357_v53 = vld [vmem:[#allocation5 + $0x788] sm:$0xff]  ;;  %v60_v55 = vld [vmem:[#allocation2 + $0x40] sm:$0xff] }
  0x79   :  { %2460 = vmatpush3.bf16.msra.mxu1 %v2459_v17  ;;  %v303_v17 = vld [vmem:[#allocation5 + $0x5d8] sm:$0xff]  ;;  %v308_v56 = vld [vmem:[#allocation5 + $0x600] sm:$0xff]  ;;  %v341_v63 = vld [vmem:[#allocation5 + $0x708] sm:$0xff]  ;;  %v92_v2 = vmax.f32 %v60_v55, 0.0 }
  0x7a   :  { %2494 = vmatprep.subr.bf16.mxu1 %v2493_v22  ;;  %840 = vmatmul.mubr.f32.vlgmr.msra.gmra.mrb[2].mxu0 %v88_v26  ;;  %v255_v22 = vld [vmem:[#allocation5 + $0x458] sm:$0xff]  ;;  %v2513_v24 = vpack.c.bf16 %v303_v17, %v302_v16  ;;  %v272_v26 = vld [vmem:[#allocation5 + $0x4e0] sm:$0xff]  ;;  %v358_v3 = vld [vmem:[#allocation5 + $0x790] sm:$0xff] }
  0x7b   :  { %2464 = vmatpush3.bf16.msra.mxu0 %v2463_v29  ;;  %979 = vmatprep.mubr.f32.mxu0 %v93_v43  ;;  %v305_v29 = vld [vmem:[#allocation5 + $0x5e8] sm:$0xff]  ;;  %v340_v61 = vld [vmem:[#allocation5 + $0x700] sm:$0xff]  ;;  %v327_v1 = vld [vmem:[#allocation5 + $0x698] sm:$0xff] }
  0x7c   :  { %910 = vmatmul.mubr.f32.vlgmr.msra.gmra.mrb[2].mxu1 %v90_v30  ;;  %2466 = vmatprep.subr.bf16.mxu0 %v2465_v33  ;;  %v2483_v30 = vpack.c.bf16 %v255_v22, %v254_v21  ;;  %v256_v33 = vld [vmem:[#allocation5 + $0x460] sm:$0xff]  ;;  %v2517_v36 = vpack.c.bf16 %v305_v29, %v304_v28  ;;  %v359_v4 = vld [vmem:[#allocation5 + $0x798] sm:$0xff]  ;;  %v65_v5 = vld [vmem:[#allocation2 + $0x68] sm:$0xff]  ;;  %v2559_v9 = vpack.c.bf16 %v341_v63, %v340_v61 }
  0x7d   :  { %2496 = vmatpush3.bf16.msra.mxu1 %v2495_v32  ;;  %1049 = vmatprep.mubr.f32.mxu1 %v95_v51  ;;  %v2485_v32 = vpack.c.bf16 %v273_v27, %v272_v26  ;;  %v2487_v42 = vpack.c.bf16 %v257_v34, %v256_v33  ;;  %v325_v51 = vld [vmem:[#allocation5 + $0x688] sm:$0xff]  ;;  %v310_v11 = vld [vmem:[#allocation5 + $0x610] sm:$0xff]  ;;  %v2561_v14 = vpack.c.bf16 %v359_v4, %v358_v3  ;;  %v343_v15 = vld [vmem:[#allocation5 + $0x718] sm:$0xff] }
  0x7e   :  { %2498 = vmatprep.subr.bf16.mxu1 %v2497_v37  ;;  %v289_v37 = vld [vmem:[#allocation5 + $0x568] sm:$0xff]  ;;  %v342_v13 = vld [vmem:[#allocation5 + $0x710] sm:$0xff]  ;;  %v328_v16 = vld [vmem:[#allocation5 + $0x6a0] sm:$0xff] }
  0x7f   :  { %2468 = vmatpush3.bf16.msra.mxu0 %v2467_v44  ;;  %v2519_v43 = vpack.c.bf16 %v289_v37, %v288_v35  ;;  %v2489_v44 = vpack.c.bf16 %v275_v39, %v274_v38  ;;  %v329_v17 = vld [vmem:[#allocation5 + $0x6a8] sm:$0xff]  ;;  %v2563_v23 = vpack.c.bf16 %v343_v15, %v342_v13  ;;  %v312_v25 = vld [vmem:[#allocation5 + $0x620] sm:$0xff]  ;;  %v363_v33 = vld [vmem:[#allocation5 + $0x7b8] sm:$0xff] }
  0x80   :  { %2470 = vmatprep.subr.bf16.mxu0 %v2469_v47  ;;  %v290_v47 = vld [vmem:[#allocation5 + $0x570] sm:$0xff]  ;;  %v313_v26 = vld [vmem:[#allocation5 + $0x628] sm:$0xff]  ;;  %v344_v27 = vld [vmem:[#allocation5 + $0x720] sm:$0xff] }
  0x81   :  { %2500 = vmatpush3.bf16.msra.mxu1 %v2499_v46  ;;  %v259_v46 = vld [vmem:[#allocation5 + $0x478] sm:$0xff]  ;;  %v2523_v57 = vpack.c.bf16 %v291_v49, %v290_v47  ;;  %v345_v29 = vld [vmem:[#allocation5 + $0x728] sm:$0xff]  ;;  %v2535_v34 = vpack.c.bf16 %v313_v26, %v312_v25  ;;  %v314_v37 = vld [vmem:[#allocation5 + $0x630] sm:$0xff] }
  0x82   :  { %2502 = vmatprep.subr.bf16.mxu1 %v2501_v52  ;;  %v356_v52 = vld [vmem:[#allocation5 + $0x780] sm:$0xff]  ;;  %v2491_v54 = vpack.c.bf16 %v259_v46, %v258_v45  ;;  %v2567_v35 = vpack.c.bf16 %v345_v29, %v344_v27  ;;  %v315_v38 = vld [vmem:[#allocation5 + $0x638] sm:$0xff]  ;;  %v346_v39 = vld [vmem:[#allocation5 + $0x730] sm:$0xff] }
  0x83   :  { %2472 = vmatpush3.bf16.msra.mxu0 %v2471_v58  ;;  %v2525_v58 = vpack.c.bf16 %v325_v51, %v324_v50  ;;  %v2557_v62 = vpack.c.bf16 %v357_v53, %v356_v52  ;;  %v347_v41 = vld [vmem:[#allocation5 + $0x738] sm:$0xff]  ;;  %v365_v45 = vld [vmem:[#allocation5 + $0x7c8] sm:$0xff]  ;;  %v2539_v46 = vpack.c.bf16 %v315_v38, %v314_v37  ;;  %v316_v49 = vld [vmem:[#allocation5 + $0x640] sm:$0xff] }
  0x84   :  { %2474 = vmatprep.subr.bf16.mxu0 %v2473_v60  ;;  %v62_v60 = vld [vmem:[#allocation2 + $0x50] sm:$0xff]  ;;  %v2571_v47 = vpack.c.bf16 %v347_v41, %v346_v39  ;;  %v317_v50 = vld [vmem:[#allocation5 + $0x648] sm:$0xff]  ;;  %v348_v51 = vld [vmem:[#allocation5 + $0x740] sm:$0xff] }
  0x85   :  { %2504 = vmatpush3.bf16.msra.mxu1 %v2503_v59  ;;  %v309_v59 = vld [vmem:[#allocation5 + $0x608] sm:$0xff]  ;;  %v335_v55 = vld [vmem:[#allocation5 + $0x6d8] sm:$0xff]  ;;  %v318_v61 = vld [vmem:[#allocation5 + $0x650] sm:$0xff] }
  0x86   :  { %2506 = vmatprep.subr.bf16.mxu1 %v2505_v0  ;;  %v326_v0 = vld [vmem:[#allocation5 + $0x690] sm:$0xff]  ;;  %v349_v53 = vld [vmem:[#allocation5 + $0x748] sm:$0xff]  ;;  %v368_v4 = vld [vmem:[#allocation5 + $0x7e0] sm:$0xff] }
  0x87   :  { %2476 = vmatpush3.bf16.msra.mxu0 %v2475_v6  ;;  %v2527_v6 = vpack.c.bf16 %v309_v59, %v308_v56  ;;  %v2529_v10 = vpack.c.bf16 %v327_v1, %v326_v0  ;;  %v366_v56 = vld [vmem:[#allocation5 + $0x7d0] sm:$0xff]  ;;  %v2575_v59 = vpack.c.bf16 %v349_v53, %v348_v51  ;;  %v351_v1 = vld [vmem:[#allocation5 + $0x758] sm:$0xff]  ;;  %v337_v3 = vld [vmem:[#allocation5 + $0x6e8] sm:$0xff] }
  0x88   :  { %2478 = vmatprep.subr.bf16.mxu0 %v2477_v8  ;;  %v67_v8 = vld [vmem:[#allocation2 + $0x78] sm:$0xff]  ;;  %v350_v63 = vld [vmem:[#allocation5 + $0x750] sm:$0xff]  ;;  %v353_v13 = vld [vmem:[#allocation5 + $0x768] sm:$0xff] }
  0x89   :  { %2508 = vmatpush3.bf16.msra.mxu1 %v2507_v7  ;;  %v94_v7 = vmax.f32 %v62_v60, 0.0  ;;  %v99_v21 = vmax.f32 %v67_v8, 0.0  ;;  %v339_v15 = vld [vmem:[#allocation5 + $0x6f8] sm:$0xff]  ;;  %v388_v26 = vld [vmem:[#allocation5 + $0x880] sm:$0xff]  ;;  %v389_v27 = vld [vmem:[#allocation5 + $0x888] sm:$0xff] }
  0x8a   :  { %2510 = vmatprep.subr.bf16.mxu1 %v2509_v12  ;;  %v311_v12 = vld [vmem:[#allocation5 + $0x618] sm:$0xff]  ;;  %v421_v29 = vld [vmem:[#allocation5 + $0x988] sm:$0xff]  ;;  %v404_v37 = vld [vmem:[#allocation5 + $0x900] sm:$0xff] }
  0x8b   :  { %2480 = vmatpush3.bf16.msra.mxu0 %v2479_v18  ;;  %v97_v18 = vmax.f32 %v65_v5, 0.0  ;;  %v2531_v22 = vpack.c.bf16 %v311_v12, %v310_v11  ;;  %v369_v5 = vld [vmem:[#allocation5 + $0x7e8] sm:$0xff]  ;;  %v352_v11 = vld [vmem:[#allocation5 + $0x760] sm:$0xff]  ;;  %v355_v25 = vld [vmem:[#allocation5 + $0x778] sm:$0xff] }
  0x8c   :  { %2482 = vmatprep.subr.bf16.mxu0 %v2481_v20  ;;  %v361_v20 = vld [vmem:[#allocation5 + $0x7a8] sm:$0xff]  ;;  %v2581_v12 = vpack.c.bf16 %v369_v5, %v368_v4  ;;  %v391_v41 = vld [vmem:[#allocation5 + $0x898] sm:$0xff]  ;;  %v374_v51 = vld [vmem:[#allocation5 + $0x810] sm:$0xff] }
  0x8d   :  { %2512 = vmatpush3.bf16.msra.mxu1 %v2511_v19  ;;  %v360_v19 = vld [vmem:[#allocation5 + $0x7a0] sm:$0xff]  ;;  %v405_v39 = vld [vmem:[#allocation5 + $0x908] sm:$0xff]  ;;  %v406_v53 = vld [vmem:[#allocation5 + $0x910] sm:$0xff] }
  0x8e   :  { %2514 = vmatprep.subr.bf16.mxu1 %v2513_v24  ;;  %v2533_v24 = vpack.c.bf16 %v329_v17, %v328_v16  ;;  %v2565_v28 = vpack.c.bf16 %v361_v20, %v360_v19  ;;  %v370_v16 = vld [vmem:[#allocation5 + $0x7f0] sm:$0xff]  ;;  %v371_v17 = vld [vmem:[#allocation5 + $0x7f8] sm:$0xff]  ;;  %v2583_v19 = vpack.c.bf16 %v353_v13, %v352_v11  ;;  %v409_v5 = vld [vmem:[#allocation5 + $0x928] sm:$0xff] }
  0x8f   :  { %2484 = vmatpush3.bf16.msra.mxu0 %v2483_v30  ;;  %v330_v30 = vld [vmem:[#allocation5 + $0x6b0] sm:$0xff] }
  0x90   :  { %2486 = vmatprep.subr.bf16.mxu0 %v2485_v32  ;;  %v362_v32 = vld [vmem:[#allocation5 + $0x7b0] sm:$0xff] }
  0x91   :  { %2516 = vmatpush3.bf16.msra.mxu1 %v2515_v31  ;;  %v331_v31 = vld [vmem:[#allocation5 + $0x6b8] sm:$0xff]  ;;  %v2569_v40 = vpack.c.bf16 %v363_v33, %v362_v32  ;;  %v372_v32 = vld [vmem:[#allocation5 + $0x800] sm:$0xff]  ;;  %v378_v13 = vld [vmem:[#allocation5 + $0x830] sm:$0xff] }
  0x92   :  { %2518 = vmatprep.subr.bf16.mxu1 %v2517_v36  ;;  %v2537_v36 = vpack.c.bf16 %v331_v31, %v330_v30  ;;  %v64_v31 = vld [vmem:[#allocation2 + $0x60] sm:$0xff] }
  0x93   :  { %2488 = vmatpush3.bf16.msra.mxu0 %v2487_v42  ;;  %v332_v42 = vld [vmem:[#allocation5 + $0x6c0] sm:$0xff] }
  0x94   :  { %2490 = vmatprep.subr.bf16.mxu0 %v2489_v44  ;;  %v364_v44 = vld [vmem:[#allocation5 + $0x7c0] sm:$0xff] }
  0x95   :  { %2520 = vmatpush3.bf16.msra.mxu1 %v2519_v43  ;;  %v333_v43 = vld [vmem:[#allocation5 + $0x6c8] sm:$0xff]  ;;  %v2573_v52 = vpack.c.bf16 %v365_v45, %v364_v44  ;;  %v423_v44 = vld [vmem:[#allocation5 + $0x998] sm:$0xff] }
  0x96   :  { %2522 = vmatprep.subr.bf16.mxu1 %v2521_v48  ;;  %v2541_v48 = vpack.c.bf16 %v333_v43, %v332_v42  ;;  %v96_v42 = vmax.f32 %v64_v31, 0.0  ;;  %v422_v43 = vld [vmem:[#allocation5 + $0x990] sm:$0xff]  ;;  %v69_v45 = vld [vmem:[#allocation2 + $0x88] sm:$0xff]  ;;  %v399_v31 = vld [vmem:[#allocation5 + $0x8d8] sm:$0xff] }
  0x97   :  { %2492 = vmatpush3.bf16.msra.mxu0 %v2491_v54  ;;  %v334_v54 = vld [vmem:[#allocation5 + $0x6d0] sm:$0xff] }
  0x98   :  { %2526 = vmatprep.subr.bf16.mxu0 %v2525_v58  ;;  %v2543_v58 = vpack.c.bf16 %v317_v50, %v316_v49  ;;  %v2545_v60 = vpack.c.bf16 %v335_v55, %v334_v54  ;;  %v2623_v49 = vpack.c.bf16 %v405_v39, %v404_v37  ;;  %v2625_v54 = vpack.c.bf16 %v423_v44, %v422_v43  ;;  %v407_v55 = vld [vmem:[#allocation5 + $0x918] sm:$0xff]  ;;  %v382_v37 = vld [vmem:[#allocation5 + $0x850] sm:$0xff]  ;;  %v401_v43 = vld [vmem:[#allocation5 + $0x8e8] sm:$0xff] }
  0x99   :  { %2524 = vmatpush3.bf16.msra.mxu1 %v2523_v57  ;;  %v367_v57 = vld [vmem:[#allocation5 + $0x7d8] sm:$0xff]  ;;  %v414_v39 = vld [vmem:[#allocation5 + $0x950] sm:$0xff]  ;;  %v432_v44 = vld [vmem:[#allocation5 + $0x9e0] sm:$0xff] }
  0x9a   :  { %2558 = vmatprep.subr.bf16.mxu1 %v2557_v62  ;;  %980 = vmatmul.mubr.f32.vlgmr.msra.gmra.mrb[4].mxu0 %v92_v2  ;;  %v319_v62 = vld [vmem:[#allocation5 + $0x658] sm:$0xff]  ;;  %v2577_v0 = vpack.c.bf16 %v367_v57, %v366_v56  ;;  %v336_v2 = vld [vmem:[#allocation5 + $0x6e0] sm:$0xff]  ;;  %v393_v57 = vld [vmem:[#allocation5 + $0x8a8] sm:$0xff] }
  0x9b   :  { %2528 = vmatpush3.bf16.msra.mxu0 %v2527_v6  ;;  %1119 = vmatprep.mubr.f32.mxu0 %v97_v18  ;;  %v2547_v6 = vpack.c.bf16 %v319_v62, %v318_v61  ;;  %v2549_v8 = vpack.c.bf16 %v337_v3, %v336_v2  ;;  %v392_v56 = vld [vmem:[#allocation5 + $0x8a0] sm:$0xff]  ;;  %v377_v2 = vld [vmem:[#allocation5 + $0x828] sm:$0xff] }
  0x9c   :  { %1050 = vmatmul.mubr.f32.vlgmr.msra.gmra.mrb[4].mxu1 %v94_v7  ;;  %2530 = vmatprep.subr.bf16.mxu0 %v2529_v10  ;;  %v2579_v7 = vpack.c.bf16 %v351_v1, %v350_v63  ;;  %v321_v10 = vld [vmem:[#allocation5 + $0x668] sm:$0xff]  ;;  %v2627_v63 = vpack.c.bf16 %v407_v55, %v406_v53  ;;  %v376_v1 = vld [vmem:[#allocation5 + $0x820] sm:$0xff]  ;;  %v403_v55 = vld [vmem:[#allocation5 + $0x8f8] sm:$0xff] }
  0x9d   :  { %2560 = vmatpush3.bf16.msra.mxu1 %v2559_v9  ;;  %1189 = vmatprep.mubr.f32.mxu1 %v99_v21  ;;  %v320_v9 = vld [vmem:[#allocation5 + $0x660] sm:$0xff]  ;;  %v322_v21 = vld [vmem:[#allocation5 + $0x670] sm:$0xff]  ;;  %v417_v53 = vld [vmem:[#allocation5 + $0x968] sm:$0xff] }
  0x9e   :  { %2562 = vmatprep.subr.bf16.mxu1 %v2561_v14  ;;  %v338_v14 = vld [vmem:[#allocation5 + $0x6f0] sm:$0xff]  ;;  %v2551_v18 = vpack.c.bf16 %v321_v10, %v320_v9  ;;  %v408_v3 = vld [vmem:[#allocation5 + $0x920] sm:$0xff]  ;;  %v427_v9 = vld [vmem:[#allocation5 + $0x9b8] sm:$0xff]  ;;  %v2599_v10 = vpack.c.bf16 %v377_v2, %v376_v1 }
  0x9f   :  { %2532 = vmatpush3.bf16.msra.mxu0 %v2531_v22  ;;  %v2553_v20 = vpack.c.bf16 %v339_v15, %v338_v14  ;;  %v323_v22 = vld [vmem:[#allocation5 + $0x678] sm:$0xff]  ;;  %v2631_v11 = vpack.c.bf16 %v409_v5, %v408_v3  ;;  %v410_v15 = vld [vmem:[#allocation5 + $0x930] sm:$0xff]  ;;  %v452_v2 = vld [vmem:[#allocation5 + $0xa80] sm:$0xff] }
  0xa0   :  { %2534 = vmatprep.subr.bf16.mxu0 %v2533_v24  ;;  %v2585_v24 = vpack.c.bf16 %v371_v17, %v370_v16  ;;  %v2555_v30 = vpack.c.bf16 %v323_v22, %v322_v21  ;;  %v379_v14 = vld [vmem:[#allocation5 + $0x838] sm:$0xff]  ;;  %v429_v21 = vld [vmem:[#allocation5 + $0x9c8] sm:$0xff] }
  0xa1   :  { %2564 = vmatpush3.bf16.msra.mxu1 %v2563_v23  ;;  %v354_v23 = vld [vmem:[#allocation5 + $0x770] sm:$0xff]  ;;  %v411_v17 = vld [vmem:[#allocation5 + $0x938] sm:$0xff]  ;;  %v2603_v22 = vpack.c.bf16 %v379_v14, %v378_v13  ;;  %v453_v3 = vld [vmem:[#allocation5 + $0xa88] sm:$0xff] }
  0xa2   :  { %2566 = vmatprep.subr.bf16.mxu1 %v2565_v28  ;;  %v420_v28 = vld [vmem:[#allocation5 + $0x980] sm:$0xff]  ;;  %v2587_v33 = vpack.c.bf16 %v355_v25, %v354_v23  ;;  %v2635_v23 = vpack.c.bf16 %v411_v17, %v410_v15  ;;  %v419_v1 = vld [vmem:[#allocation5 + $0x978] sm:$0xff]  ;;  %v485_v5 = vld [vmem:[#allocation5 + $0xb88] sm:$0xff] }
  0xa3   :  { %2536 = vmatpush3.bf16.msra.mxu0 %v2535_v34  ;;  %v2589_v34 = vpack.c.bf16 %v389_v27, %v388_v26  ;;  %v2621_v38 = vpack.c.bf16 %v421_v29, %v420_v28  ;;  %v380_v25 = vld [vmem:[#allocation5 + $0x840] sm:$0xff]  ;;  %v381_v26 = vld [vmem:[#allocation5 + $0x848] sm:$0xff]  ;;  %v455_v17 = vld [vmem:[#allocation5 + $0xa98] sm:$0xff] }
  0xa4   :  { %2538 = vmatprep.subr.bf16.mxu0 %v2537_v36  ;;  %v66_v36 = vld [vmem:[#allocation2 + $0x70] sm:$0xff]  ;;  %v412_v27 = vld [vmem:[#allocation5 + $0x940] sm:$0xff]  ;;  %v413_v29 = vld [vmem:[#allocation5 + $0x948] sm:$0xff] }
  0xa5   :  { %2568 = vmatpush3.bf16.msra.mxu1 %v2567_v35  ;;  %v373_v35 = vld [vmem:[#allocation5 + $0x808] sm:$0xff]  ;;  %v468_v13 = vld [vmem:[#allocation5 + $0xb00] sm:$0xff] }
  0xa6   :  { %2570 = vmatprep.subr.bf16.mxu1 %v2569_v40  ;;  %v390_v40 = vld [vmem:[#allocation5 + $0x890] sm:$0xff]  ;;  %v469_v15 = vld [vmem:[#allocation5 + $0xb08] sm:$0xff] }
  0xa7   :  { %2540 = vmatpush3.bf16.msra.mxu0 %v2539_v46  ;;  %v2591_v46 = vpack.c.bf16 %v373_v35, %v372_v32  ;;  %v2593_v50 = vpack.c.bf16 %v391_v41, %v390_v40  ;;  %v430_v32 = vld [vmem:[#allocation5 + $0x9d0] sm:$0xff]  ;;  %v2639_v35 = vpack.c.bf16 %v413_v29, %v412_v27  ;;  %v415_v41 = vld [vmem:[#allocation5 + $0x958] sm:$0xff] }
  0xa8   :  { %2542 = vmatprep.subr.bf16.mxu0 %v2541_v48  ;;  %v71_v48 = vld [vmem:[#allocation2 + $0x98] sm:$0xff]  ;;  %v438_v27 = vld [vmem:[#allocation5 + $0xa10] sm:$0xff] }
  0xa9   :  { %2572 = vmatpush3.bf16.msra.mxu1 %v2571_v47  ;;  %v98_v47 = vmax.f32 %v66_v36, 0.0  ;;  %v103_v61 = vmax.f32 %v71_v48, 0.0  ;;  %v470_v29 = vld [vmem:[#allocation5 + $0xb10] sm:$0xff] }
  0xaa   :  { %2574 = vmatprep.subr.bf16.mxu1 %v2573_v52  ;;  %v375_v52 = vld [vmem:[#allocation5 + $0x818] sm:$0xff] }
  0xab   :  { %2544 = vmatpush3.bf16.msra.mxu0 %v2543_v58  ;;  %v101_v58 = vmax.f32 %v69_v45, 0.0  ;;  %v2595_v62 = vpack.c.bf16 %v375_v52, %v374_v51  ;;  %v433_v45 = vld [vmem:[#allocation5 + $0x9e8] sm:$0xff]  ;;  %v416_v51 = vld [vmem:[#allocation5 + $0x960] sm:$0xff] }
  0xac   :  { %2546 = vmatprep.subr.bf16.mxu0 %v2545_v60  ;;  %v425_v60 = vld [vmem:[#allocation5 + $0x9a8] sm:$0xff]  ;;  %v2645_v52 = vpack.c.bf16 %v433_v45, %v432_v44 }
  0xad   :  { %2576 = vmatpush3.bf16.msra.mxu1 %v2575_v59  ;;  %v424_v59 = vld [vmem:[#allocation5 + $0x9a0] sm:$0xff]  ;;  %v473_v45 = vld [vmem:[#allocation5 + $0xb28] sm:$0xff] }
  0xae   :  { %2578 = vmatprep.subr.bf16.mxu1 %v2577_v0  ;;  %v2597_v0 = vpack.c.bf16 %v393_v57, %v392_v56  ;;  %v2629_v4 = vpack.c.bf16 %v425_v60, %v424_v59  ;;  %v434_v56 = vld [vmem:[#allocation5 + $0x9f0] sm:$0xff]  ;;  %v435_v57 = vld [vmem:[#allocation5 + $0x9f8] sm:$0xff]  ;;  %v2647_v59 = vpack.c.bf16 %v417_v53, %v416_v51 }
  0xaf   :  { %2548 = vmatpush3.bf16.msra.mxu0 %v2547_v6  ;;  %v394_v6 = vld [vmem:[#allocation5 + $0x8b0] sm:$0xff] }
  0xb0   :  { %2550 = vmatprep.subr.bf16.mxu0 %v2549_v8  ;;  %v426_v8 = vld [vmem:[#allocation5 + $0x9b0] sm:$0xff] }
  0xb1   :  { %2580 = vmatpush3.bf16.msra.mxu1 %v2579_v7  ;;  %v395_v7 = vld [vmem:[#allocation5 + $0x8b8] sm:$0xff]  ;;  %v2633_v16 = vpack.c.bf16 %v427_v9, %v426_v8  ;;  %v436_v8 = vld [vmem:[#allocation5 + $0xa00] sm:$0xff]  ;;  %v442_v53 = vld [vmem:[#allocation5 + $0xa30] sm:$0xff] }
  0xb2   :  { %2582 = vmatprep.subr.bf16.mxu1 %v2581_v12  ;;  %v2601_v12 = vpack.c.bf16 %v395_v7, %v394_v6  ;;  %v68_v7 = vld [vmem:[#allocation2 + $0x80] sm:$0xff] }
  0xb3   :  { %2552 = vmatpush3.bf16.msra.mxu0 %v2551_v18  ;;  %v396_v18 = vld [vmem:[#allocation5 + $0x8c0] sm:$0xff] }
  0xb4   :  { %2554 = vmatprep.subr.bf16.mxu0 %v2553_v20  ;;  %v428_v20 = vld [vmem:[#allocation5 + $0x9c0] sm:$0xff] }
  0xb5   :  { %2584 = vmatpush3.bf16.msra.mxu1 %v2583_v19  ;;  %v397_v19 = vld [vmem:[#allocation5 + $0x8c8] sm:$0xff]  ;;  %v2637_v28 = vpack.c.bf16 %v429_v21, %v428_v20  ;;  %v487_v20 = vld [vmem:[#allocation5 + $0xb98] sm:$0xff] }
  0xb6   :  { %2586 = vmatprep.subr.bf16.mxu1 %v2585_v24  ;;  %v2605_v24 = vpack.c.bf16 %v397_v19, %v396_v18  ;;  %v100_v18 = vmax.f32 %v68_v7, 0.0  ;;  %v486_v19 = vld [vmem:[#allocation5 + $0xb90] sm:$0xff]  ;;  %v73_v21 = vld [vmem:[#allocation2 + $0xa8] sm:$0xff]  ;;  %v463_v7 = vld [vmem:[#allocation5 + $0xad8] sm:$0xff] }
  0xb7   :  { %2556 = vmatpush3.bf16.msra.mxu0 %v2555_v30  ;;  %v398_v30 = vld [vmem:[#allocation5 + $0x8d0] sm:$0xff] }
  0xb8   :  { %2590 = vmatprep.subr.bf16.mxu0 %v2589_v34  ;;  %v2607_v34 = vpack.c.bf16 %v381_v26, %v380_v25  ;;  %v2609_v36 = vpack.c.bf16 %v399_v31, %v398_v30  ;;  %v2687_v25 = vpack.c.bf16 %v469_v15, %v468_v13  ;;  %v2689_v30 = vpack.c.bf16 %v487_v20, %v486_v19  ;;  %v471_v31 = vld [vmem:[#allocation5 + $0xb18] sm:$0xff]  ;;  %v446_v13 = vld [vmem:[#allocation5 + $0xa50] sm:$0xff]  ;;  %v465_v19 = vld [vmem:[#allocation5 + $0xae8] sm:$0xff] }
  0xb9   :  { %2588 = vmatpush3.bf16.msra.mxu1 %v2587_v33  ;;  %v431_v33 = vld [vmem:[#allocation5 + $0x9d8] sm:$0xff]  ;;  %v478_v15 = vld [vmem:[#allocation5 + $0xb50] sm:$0xff]  ;;  %v496_v20 = vld [vmem:[#allocation5 + $0xbe0] sm:$0xff] }
  0xba   :  { %2622 = vmatprep.subr.bf16.mxu1 %v2621_v38  ;;  %1120 = vmatmul.mubr.f32.vlgmr.msra.gmra.mrb[6].mxu0 %v96_v42  ;;  %v383_v38 = vld [vmem:[#allocation5 + $0x858] sm:$0xff]  ;;  %v2641_v40 = vpack.c.bf16 %v431_v33, %v430_v32  ;;  %v400_v42 = vld [vmem:[#allocation5 + $0x8e0] sm:$0xff]  ;;  %v457_v33 = vld [vmem:[#allocation5 + $0xaa8] sm:$0xff] }
  0xbb   :  { %2592 = vmatpush3.bf16.msra.mxu0 %v2591_v46  ;;  %1259 = vmatprep.mubr.f32.mxu0 %v101_v58  ;;  %v2611_v46 = vpack.c.bf16 %v383_v38, %v382_v37  ;;  %v2613_v48 = vpack.c.bf16 %v401_v43, %v400_v42  ;;  %v456_v32 = vld [vmem:[#allocation5 + $0xaa0] sm:$0xff]  ;;  %v441_v42 = vld [vmem:[#allocation5 + $0xa28] sm:$0xff] }
  0xbc   :  { %1190 = vmatmul.mubr.f32.vlgmr.msra.gmra.mrb[6].mxu1 %v98_v47  ;;  %2594 = vmatprep.subr.bf16.mxu0 %v2593_v50  ;;  %v2643_v47 = vpack.c.bf16 %v415_v41, %v414_v39  ;;  %v385_v50 = vld [vmem:[#allocation5 + $0x868] sm:$0xff]  ;;  %v2691_v39 = vpack.c.bf16 %v471_v31, %v470_v29  ;;  %v440_v41 = vld [vmem:[#allocation5 + $0xa20] sm:$0xff]  ;;  %v467_v31 = vld [vmem:[#allocation5 + $0xaf8] sm:$0xff] }
  0xbd   :  { %2624 = vmatpush3.bf16.msra.mxu1 %v2623_v49  ;;  %1329 = vmatprep.mubr.f32.mxu1 %v103_v61  ;;  %v384_v49 = vld [vmem:[#allocation5 + $0x860] sm:$0xff]  ;;  %v386_v61 = vld [vmem:[#allocation5 + $0x870] sm:$0xff]  ;;  %v481_v29 = vld [vmem:[#allocation5 + $0xb68] sm:$0xff] }
  0xbe   :  { %2626 = vmatprep.subr.bf16.mxu1 %v2625_v54  ;;  %v402_v54 = vld [vmem:[#allocation5 + $0x8f0] sm:$0xff]  ;;  %v2615_v58 = vpack.c.bf16 %v385_v50, %v384_v49  ;;  %v472_v43 = vld [vmem:[#allocation5 + $0xb20] sm:$0xff]  ;;  %v491_v49 = vld [vmem:[#allocation5 + $0xbb8] sm:$0xff]  ;;  %v2663_v50 = vpack.c.bf16 %v441_v42, %v440_v41 }
  0xbf   :  { %2596 = vmatpush3.bf16.msra.mxu0 %v2595_v62  ;;  %v2617_v60 = vpack.c.bf16 %v403_v55, %v402_v54  ;;  %v387_v62 = vld [vmem:[#allocation5 + $0x878] sm:$0xff]  ;;  %v2695_v51 = vpack.c.bf16 %v473_v45, %v472_v43  ;;  %v474_v55 = vld [vmem:[#allocation5 + $0xb30] sm:$0xff]  ;;  %v516_v42 = vld [vmem:[#allocation5 + $0xc80] sm:$0xff] }
  0xc0   :  { %2598 = vmatprep.subr.bf16.mxu0 %v2597_v0  ;;  %v2649_v0 = vpack.c.bf16 %v435_v57, %v434_v56  ;;  %v2619_v6 = vpack.c.bf16 %v387_v62, %v386_v61  ;;  %v443_v54 = vld [vmem:[#allocation5 + $0xa38] sm:$0xff]  ;;  %v493_v61 = vld [vmem:[#allocation5 + $0xbc8] sm:$0xff] }
  0xc1   :  { %2628 = vmatpush3.bf16.msra.mxu1 %v2627_v63  ;;  %v418_v63 = vld [vmem:[#allocation5 + $0x970] sm:$0xff]  ;;  %v475_v57 = vld [vmem:[#allocation5 + $0xb38] sm:$0xff]  ;;  %v2667_v62 = vpack.c.bf16 %v443_v54, %v442_v53  ;;  %v517_v43 = vld [vmem:[#allocation5 + $0xc88] sm:$0xff] }
  0xc2   :  { %2630 = vmatprep.subr.bf16.mxu1 %v2629_v4  ;;  %v484_v4 = vld [vmem:[#allocation5 + $0xb80] sm:$0xff]  ;;  %v2651_v9 = vpack.c.bf16 %v419_v1, %v418_v63  ;;  %v2699_v63 = vpack.c.bf16 %v475_v57, %v474_v55  ;;  %v483_v41 = vld [vmem:[#allocation5 + $0xb78] sm:$0xff]  ;;  %v549_v45 = vld [vmem:[#allocation5 + $0xd88] sm:$0xff] }
  0xc3   :  { %2600 = vmatpush3.bf16.msra.mxu0 %v2599_v10  ;;  %v2653_v10 = vpack.c.bf16 %v453_v3, %v452_v2  ;;  %v2685_v14 = vpack.c.bf16 %v485_v5, %v484_v4  ;;  %v444_v1 = vld [vmem:[#allocation5 + $0xa40] sm:$0xff]  ;;  %v445_v2 = vld [vmem:[#allocation5 + $0xa48] sm:$0xff]  ;;  %v519_v57 = vld [vmem:[#allocation5 + $0xc98] sm:$0xff] }
  0xc4   :  { %2602 = vmatprep.subr.bf16.mxu0 %v2601_v12  ;;  %v70_v12 = vld [vmem:[#allocation2 + $0x90] sm:$0xff]  ;;  %v476_v3 = vld [vmem:[#allocation5 + $0xb40] sm:$0xff]  ;;  %v477_v5 = vld [vmem:[#allocation5 + $0xb48] sm:$0xff] }
  0xc5   :  { %2632 = vmatpush3.bf16.msra.mxu1 %v2631_v11  ;;  %v437_v11 = vld [vmem:[#allocation5 + $0xa08] sm:$0xff]  ;;  %v532_v53 = vld [vmem:[#allocation5 + $0xd00] sm:$0xff] }
  0xc6   :  { %2634 = vmatprep.subr.bf16.mxu1 %v2633_v16  ;;  %v454_v16 = vld [vmem:[#allocation5 + $0xa90] sm:$0xff]  ;;  %v533_v55 = vld [vmem:[#allocation5 + $0xd08] sm:$0xff] }
  0xc7   :  { %2604 = vmatpush3.bf16.msra.mxu0 %v2603_v22  ;;  %v2655_v22 = vpack.c.bf16 %v437_v11, %v436_v8  ;;  %v2657_v26 = vpack.c.bf16 %v455_v17, %v454_v16  ;;  %v494_v8 = vld [vmem:[#allocation5 + $0xbd0] sm:$0xff]  ;;  %v2703_v11 = vpack.c.bf16 %v477_v5, %v476_v3  ;;  %v479_v17 = vld [vmem:[#allocation5 + $0xb58] sm:$0xff] }
  0xc8   :  { %2606 = vmatprep.subr.bf16.mxu0 %v2605_v24  ;;  %v75_v24 = vld [vmem:[#allocation2 + $0xb8] sm:$0xff]  ;;  %v502_v3 = vld [vmem:[#allocation5 + $0xc10] sm:$0xff] }
  0xc9   :  { %2636 = vmatpush3.bf16.msra.mxu1 %v2635_v23  ;;  %v102_v23 = vmax.f32 %v70_v12, 0.0  ;;  %v107_v37 = vmax.f32 %v75_v24, 0.0  ;;  %v534_v5 = vld [vmem:[#allocation5 + $0xd10] sm:$0xff] }
  0xca   :  { %2638 = vmatprep.subr.bf16.mxu1 %v2637_v28  ;;  %v439_v28 = vld [vmem:[#allocation5 + $0xa18] sm:$0xff] }
  0xcb   :  { %2608 = vmatpush3.bf16.msra.mxu0 %v2607_v34  ;;  %v105_v34 = vmax.f32 %v73_v21, 0.0  ;;  %v2659_v38 = vpack.c.bf16 %v439_v28, %v438_v27  ;;  %v497_v21 = vld [vmem:[#allocation5 + $0xbe8] sm:$0xff]  ;;  %v480_v27 = vld [vmem:[#allocation5 + $0xb60] sm:$0xff] }
  0xcc   :  { %2610 = vmatprep.subr.bf16.mxu0 %v2609_v36  ;;  %v489_v36 = vld [vmem:[#allocation5 + $0xba8] sm:$0xff]  ;;  %v2709_v28 = vpack.c.bf16 %v497_v21, %v496_v20 }
  0xcd   :  { %2640 = vmatpush3.bf16.msra.mxu1 %v2639_v35  ;;  %v488_v35 = vld [vmem:[#allocation5 + $0xba0] sm:$0xff]  ;;  %v537_v21 = vld [vmem:[#allocation5 + $0xd28] sm:$0xff] }
  0xce   :  { %2642 = vmatprep.subr.bf16.mxu1 %v2641_v40  ;;  %v2661_v40 = vpack.c.bf16 %v457_v33, %v456_v32  ;;  %v2693_v44 = vpack.c.bf16 %v489_v36, %v488_v35  ;;  %v498_v32 = vld [vmem:[#allocation5 + $0xbf0] sm:$0xff]  ;;  %v499_v33 = vld [vmem:[#allocation5 + $0xbf8] sm:$0xff]  ;;  %v2711_v35 = vpack.c.bf16 %v481_v29, %v480_v27 }
  0xcf   :  { %2612 = vmatpush3.bf16.msra.mxu0 %v2611_v46  ;;  %v458_v46 = vld [vmem:[#allocation5 + $0xab0] sm:$0xff] }
  0xd0   :  { %2614 = vmatprep.subr.bf16.mxu0 %v2613_v48  ;;  %v490_v48 = vld [vmem:[#allocation5 + $0xbb0] sm:$0xff] }
  0xd1   :  { %2644 = vmatpush3.bf16.msra.mxu1 %v2643_v47  ;;  %v459_v47 = vld [vmem:[#allocation5 + $0xab8] sm:$0xff]  ;;  %v2697_v56 = vpack.c.bf16 %v491_v49, %v490_v48  ;;  %v500_v48 = vld [vmem:[#allocation5 + $0xc00] sm:$0xff]  ;;  %v506_v29 = vld [vmem:[#allocation5 + $0xc30] sm:$0xff] }
  0xd2   :  { %2646 = vmatprep.subr.bf16.mxu1 %v2645_v52  ;;  %v2665_v52 = vpack.c.bf16 %v459_v47, %v458_v46  ;;  %v72_v47 = vld [vmem:[#allocation2 + $0xa0] sm:$0xff] }
  0xd3   :  { %2616 = vmatpush3.bf16.msra.mxu0 %v2615_v58  ;;  %v460_v58 = vld [vmem:[#allocation5 + $0xac0] sm:$0xff] }
  0xd4   :  { %2618 = vmatprep.subr.bf16.mxu0 %v2617_v60  ;;  %v492_v60 = vld [vmem:[#allocation5 + $0xbc0] sm:$0xff] }
  0xd5   :  { %2648 = vmatpush3.bf16.msra.mxu1 %v2647_v59  ;;  %v461_v59 = vld [vmem:[#allocation5 + $0xac8] sm:$0xff]  ;;  %v2701_v4 = vpack.c.bf16 %v493_v61, %v492_v60  ;;  %v551_v60 = vld [vmem:[#allocation5 + $0xd98] sm:$0xff] }
  0xd6   :  { %2650 = vmatprep.subr.bf16.mxu1 %v2649_v0  ;;  %v2669_v0 = vpack.c.bf16 %v461_v59, %v460_v58  ;;  %v104_v58 = vmax.f32 %v72_v47, 0.0  ;;  %v550_v59 = vld [vmem:[#allocation5 + $0xd90] sm:$0xff]  ;;  %v77_v61 = vld [vmem:[#allocation2 + $0xc8] sm:$0xff]  ;;  %v527_v47 = vld [vmem:[#allocation5 + $0xcd8] sm:$0xff] }
  0xd7   :  { %2620 = vmatpush3.bf16.msra.mxu0 %v2619_v6  ;;  %v462_v6 = vld [vmem:[#allocation5 + $0xad0] sm:$0xff] }
  0xd8   :  { %2654 = vmatprep.subr.bf16.mxu0 %v2653_v10  ;;  %v2671_v10 = vpack.c.bf16 %v445_v2, %v444_v1  ;;  %v2673_v12 = vpack.c.bf16 %v463_v7, %v462_v6  ;;  %v2751_v1 = vpack.c.bf16 %v533_v55, %v532_v53  ;;  %v2753_v6 = vpack.c.bf16 %v551_v60, %v550_v59  ;;  %v535_v7 = vld [vmem:[#allocation5 + $0xd18] sm:$0xff]  ;;  %v510_v53 = vld [vmem:[#allocation5 + $0xc50] sm:$0xff]  ;;  %v529_v59 = vld [vmem:[#allocation5 + $0xce8] sm:$0xff] }
  0xd9   :  { %2652 = vmatpush3.bf16.msra.mxu1 %v2651_v9  ;;  %v495_v9 = vld [vmem:[#allocation5 + $0xbd8] sm:$0xff]  ;;  %v542_v55 = vld [vmem:[#allocation5 + $0xd50] sm:$0xff]  ;;  %v560_v60 = vld [vmem:[#allocation5 + $0xde0] sm:$0xff] }
  0xda   :  { %2686 = vmatprep.subr.bf16.mxu1 %v2685_v14  ;;  %1260 = vmatmul.mubr.f32.vlgmr.msra.gmra.mrb[8].mxu0 %v100_v18  ;;  %v447_v14 = vld [vmem:[#allocation5 + $0xa58] sm:$0xff]  ;;  %v2705_v16 = vpack.c.bf16 %v495_v9, %v494_v8  ;;  %v464_v18 = vld [vmem:[#allocation5 + $0xae0] sm:$0xff]  ;;  %v521_v9 = vld [vmem:[#allocation5 + $0xca8] sm:$0xff] }
  0xdb   :  { %2656 = vmatpush3.bf16.msra.mxu0 %v2655_v22  ;;  %1399 = vmatprep.mubr.f32.mxu0 %v105_v34  ;;  %v2675_v22 = vpack.c.bf16 %v447_v14, %v446_v13  ;;  %v2677_v24 = vpack.c.bf16 %v465_v19, %v464_v18  ;;  %v520_v8 = vld [vmem:[#allocation5 + $0xca0] sm:$0xff]  ;;  %v505_v18 = vld [vmem:[#allocation5 + $0xc28] sm:$0xff] }
  0xdc   :  { %1330 = vmatmul.mubr.f32.vlgmr.msra.gmra.mrb[8].mxu1 %v102_v23  ;;  %2658 = vmatprep.subr.bf16.mxu0 %v2657_v26  ;;  %v2707_v23 = vpack.c.bf16 %v479_v17, %v478_v15  ;;  %v449_v26 = vld [vmem:[#allocation5 + $0xa68] sm:$0xff]  ;;  %v2755_v15 = vpack.c.bf16 %v535_v7, %v534_v5  ;;  %v504_v17 = vld [vmem:[#allocation5 + $0xc20] sm:$0xff]  ;;  %v531_v7 = vld [vmem:[#allocation5 + $0xcf8] sm:$0xff] }
  0xdd   :  { %2688 = vmatpush3.bf16.msra.mxu1 %v2687_v25  ;;  %1469 = vmatprep.mubr.f32.mxu1 %v107_v37  ;;  %v448_v25 = vld [vmem:[#allocation5 + $0xa60] sm:$0xff]  ;;  %v450_v37 = vld [vmem:[#allocation5 + $0xa70] sm:$0xff]  ;;  %v545_v5 = vld [vmem:[#allocation5 + $0xd68] sm:$0xff] }
  0xde   :  { %2690 = vmatprep.subr.bf16.mxu1 %v2689_v30  ;;  %v466_v30 = vld [vmem:[#allocation5 + $0xaf0] sm:$0xff]  ;;  %v2679_v34 = vpack.c.bf16 %v449_v26, %v448_v25  ;;  %v536_v19 = vld [vmem:[#allocation5 + $0xd20] sm:$0xff]  ;;  %v555_v25 = vld [vmem:[#allocation5 + $0xdb8] sm:$0xff]  ;;  %v2727_v26 = vpack.c.bf16 %v505_v18, %v504_v17 }
  0xdf   :  { %2660 = vmatpush3.bf16.msra.mxu0 %v2659_v38  ;;  %v2681_v36 = vpack.c.bf16 %v467_v31, %v466_v30  ;;  %v451_v38 = vld [vmem:[#allocation5 + $0xa78] sm:$0xff]  ;;  %v2759_v27 = vpack.c.bf16 %v537_v21, %v536_v19  ;;  %v538_v31 = vld [vmem:[#allocation5 + $0xd30] sm:$0xff]  ;;  %v580_v18 = vld [vmem:[#allocation5 + $0xe80] sm:$0xff] }
  0xe0   :  { %2662 = vmatprep.subr.bf16.mxu0 %v2661_v40  ;;  %v2713_v40 = vpack.c.bf16 %v499_v33, %v498_v32  ;;  %v2683_v46 = vpack.c.bf16 %v451_v38, %v450_v37  ;;  %v507_v30 = vld [vmem:[#allocation5 + $0xc38] sm:$0xff]  ;;  %v557_v37 = vld [vmem:[#allocation5 + $0xdc8] sm:$0xff] }
  0xe1   :  { %2692 = vmatpush3.bf16.msra.mxu1 %v2691_v39  ;;  %v482_v39 = vld [vmem:[#allocation5 + $0xb70] sm:$0xff]  ;;  %v539_v33 = vld [vmem:[#allocation5 + $0xd38] sm:$0xff]  ;;  %v2731_v38 = vpack.c.bf16 %v507_v30, %v506_v29  ;;  %v581_v19 = vld [vmem:[#allocation5 + $0xe88] sm:$0xff] }
  0xe2   :  { %2694 = vmatprep.subr.bf16.mxu1 %v2693_v44  ;;  %v548_v44 = vld [vmem:[#allocation5 + $0xd80] sm:$0xff]  ;;  %v2715_v49 = vpack.c.bf16 %v483_v41, %v482_v39  ;;  %v2763_v39 = vpack.c.bf16 %v539_v33, %v538_v31  ;;  %v547_v17 = vld [vmem:[#allocation5 + $0xd78] sm:$0xff]  ;;  %v613_v21 = vld [vmem:[#allocation5 + $0xf88] sm:$0xff] }
  0xe3   :  { %2664 = vmatpush3.bf16.msra.mxu0 %v2663_v50  ;;  %v2717_v50 = vpack.c.bf16 %v517_v43, %v516_v42  ;;  %v2749_v54 = vpack.c.bf16 %v549_v45, %v548_v44  ;;  %v508_v41 = vld [vmem:[#allocation5 + $0xc40] sm:$0xff]  ;;  %v509_v42 = vld [vmem:[#allocation5 + $0xc48] sm:$0xff]  ;;  %v583_v33 = vld [vmem:[#allocation5 + $0xe98] sm:$0xff] }
  0xe4   :  { %2666 = vmatprep.subr.bf16.mxu0 %v2665_v52  ;;  %v74_v52 = vld [vmem:[#allocation2 + $0xb0] sm:$0xff]  ;;  %v540_v43 = vld [vmem:[#allocation5 + $0xd40] sm:$0xff]  ;;  %v541_v45 = vld [vmem:[#allocation5 + $0xd48] sm:$0xff] }
  0xe5   :  { %2696 = vmatpush3.bf16.msra.mxu1 %v2695_v51  ;;  %v501_v51 = vld [vmem:[#allocation5 + $0xc08] sm:$0xff]  ;;  %v596_v29 = vld [vmem:[#allocation5 + $0xf00] sm:$0xff] }
  0xe6   :  { %2698 = vmatprep.subr.bf16.mxu1 %v2697_v56  ;;  %v518_v56 = vld [vmem:[#allocation5 + $0xc90] sm:$0xff]  ;;  %v597_v31 = vld [vmem:[#allocation5 + $0xf08] sm:$0xff] }
  0xe7   :  { %2668 = vmatpush3.bf16.msra.mxu0 %v2667_v62  ;;  %v2719_v62 = vpack.c.bf16 %v501_v51, %v500_v48  ;;  %v2721_v2 = vpack.c.bf16 %v519_v57, %v518_v56  ;;  %v558_v48 = vld [vmem:[#allocation5 + $0xdd0] sm:$0xff]  ;;  %v2767_v51 = vpack.c.bf16 %v541_v45, %v540_v43  ;;  %v543_v57 = vld [vmem:[#allocation5 + $0xd58] sm:$0xff] }
  0xe8   :  { %2670 = vmatprep.subr.bf16.mxu0 %v2669_v0  ;;  %v79_v0 = vld [vmem:[#allocation2 + $0xd8] sm:$0xff]  ;;  %v566_v43 = vld [vmem:[#allocation5 + $0xe10] sm:$0xff] }
  0xe9   :  { %2700 = vmatpush3.bf16.msra.mxu1 %v2699_v63  ;;  %v106_v63 = vmax.f32 %v74_v52, 0.0  ;;  %v111_v13 = vmax.f32 %v79_v0, 0.0  ;;  %v598_v45 = vld [vmem:[#allocation5 + $0xf10] sm:$0xff] }
  0xea   :  { %2702 = vmatprep.subr.bf16.mxu1 %v2701_v4  ;;  %v503_v4 = vld [vmem:[#allocation5 + $0xc18] sm:$0xff] }
  0xeb   :  { %2672 = vmatpush3.bf16.msra.mxu0 %v2671_v10  ;;  %v109_v10 = vmax.f32 %v77_v61, 0.0  ;;  %v2723_v14 = vpack.c.bf16 %v503_v4, %v502_v3  ;;  %v561_v61 = vld [vmem:[#allocation5 + $0xde8] sm:$0xff]  ;;  %v544_v3 = vld [vmem:[#allocation5 + $0xd60] sm:$0xff] }
  0xec   :  { %2674 = vmatprep.subr.bf16.mxu0 %v2673_v12  ;;  %v553_v12 = vld [vmem:[#allocation5 + $0xda8] sm:$0xff]  ;;  %v2773_v4 = vpack.c.bf16 %v561_v61, %v560_v60 }
  0xed   :  { %2704 = vmatpush3.bf16.msra.mxu1 %v2703_v11  ;;  %v552_v11 = vld [vmem:[#allocation5 + $0xda0] sm:$0xff]  ;;  %v601_v61 = vld [vmem:[#allocation5 + $0xf28] sm:$0xff] }
  0xee   :  { %2706 = vmatprep.subr.bf16.mxu1 %v2705_v16  ;;  %v2725_v16 = vpack.c.bf16 %v521_v9, %v520_v8  ;;  %v2757_v20 = vpack.c.bf16 %v553_v12, %v552_v11  ;;  %v562_v8 = vld [vmem:[#allocation5 + $0xdf0] sm:$0xff]  ;;  %v563_v9 = vld [vmem:[#allocation5 + $0xdf8] sm:$0xff]  ;;  %v2775_v11 = vpack.c.bf16 %v545_v5, %v544_v3 }
  0xef   :  { %2676 = vmatpush3.bf16.msra.mxu0 %v2675_v22  ;;  %v522_v22 = vld [vmem:[#allocation5 + $0xcb0] sm:$0xff] }
  0xf0   :  { %2678 = vmatprep.subr.bf16.mxu0 %v2677_v24  ;;  %v554_v24 = vld [vmem:[#allocation5 + $0xdb0] sm:$0xff] }
  0xf1   :  { %2708 = vmatpush3.bf16.msra.mxu1 %v2707_v23  ;;  %v523_v23 = vld [vmem:[#allocation5 + $0xcb8] sm:$0xff]  ;;  %v2761_v32 = vpack.c.bf16 %v555_v25, %v554_v24  ;;  %v564_v24 = vld [vmem:[#allocation5 + $0xe00] sm:$0xff]  ;;  %v570_v5 = vld [vmem:[#allocation5 + $0xe30] sm:$0xff] }
  0xf2   :  { %2710 = vmatprep.subr.bf16.mxu1 %v2709_v28  ;;  %v2729_v28 = vpack.c.bf16 %v523_v23, %v522_v22  ;;  %v76_v23 = vld [vmem:[#allocation2 + $0xc0] sm:$0xff] }
  0xf3   :  { %2680 = vmatpush3.bf16.msra.mxu0 %v2679_v34  ;;  %v524_v34 = vld [vmem:[#allocation5 + $0xcc0] sm:$0xff] }
  0xf4   :  { %2682 = vmatprep.subr.bf16.mxu0 %v2681_v36  ;;  %v556_v36 = vld [vmem:[#allocation5 + $0xdc0] sm:$0xff] }
  0xf5   :  { %2712 = vmatpush3.bf16.msra.mxu1 %v2711_v35  ;;  %v525_v35 = vld [vmem:[#allocation5 + $0xcc8] sm:$0xff]  ;;  %v2765_v44 = vpack.c.bf16 %v557_v37, %v556_v36  ;;  %v615_v36 = vld [vmem:[#allocation5 + $0xf98] sm:$0xff] }
  0xf6   :  { %2714 = vmatprep.subr.bf16.mxu1 %v2713_v40  ;;  %v2733_v40 = vpack.c.bf16 %v525_v35, %v524_v34  ;;  %v108_v34 = vmax.f32 %v76_v23, 0.0  ;;  %v614_v35 = vld [vmem:[#allocation5 + $0xf90] sm:$0xff]  ;;  %v81_v37 = vld [vmem:[#allocation2 + $0xe8] sm:$0xff]  ;;  %v591_v23 = vld [vmem:[#allocation5 + $0xed8] sm:$0xff] }
  0xf7   :  { %2684 = vmatpush3.bf16.msra.mxu0 %v2683_v46  ;;  %v526_v46 = vld [vmem:[#allocation5 + $0xcd0] sm:$0xff] }
  0xf8   :  { %2718 = vmatprep.subr.bf16.mxu0 %v2717_v50  ;;  %v2735_v50 = vpack.c.bf16 %v509_v42, %v508_v41  ;;  %v2737_v52 = vpack.c.bf16 %v527_v47, %v526_v46  ;;  %v2815_v41 = vpack.c.bf16 %v597_v31, %v596_v29  ;;  %v2817_v46 = vpack.c.bf16 %v615_v36, %v614_v35  ;;  %v599_v47 = vld [vmem:[#allocation5 + $0xf18] sm:$0xff]  ;;  %v574_v29 = vld [vmem:[#allocation5 + $0xe50] sm:$0xff]  ;;  %v593_v35 = vld [vmem:[#allocation5 + $0xee8] sm:$0xff] }
  0xf9   :  { %2716 = vmatpush3.bf16.msra.mxu1 %v2715_v49  ;;  %v559_v49 = vld [vmem:[#allocation5 + $0xdd8] sm:$0xff]  ;;  %v606_v31 = vld [vmem:[#allocation5 + $0xf50] sm:$0xff]  ;;  %v624_v36 = vld [vmem:[#allocation5 + $0xfe0] sm:$0xff] }
  0xfa   :  { %2750 = vmatprep.subr.bf16.mxu1 %v2749_v54  ;;  %1400 = vmatmul.mubr.f32.vlgmr.msra.gmra.mrb[10].mxu0 %v104_v58  ;;  %v511_v54 = vld [vmem:[#allocation5 + $0xc58] sm:$0xff]  ;;  %v2769_v56 = vpack.c.bf16 %v559_v49, %v558_v48  ;;  %v528_v58 = vld [vmem:[#allocation5 + $0xce0] sm:$0xff]  ;;  %v585_v49 = vld [vmem:[#allocation5 + $0xea8] sm:$0xff] }
  0xfb   :  { %2720 = vmatpush3.bf16.msra.mxu0 %v2719_v62  ;;  %1539 = vmatprep.mubr.f32.mxu0 %v109_v10  ;;  %v2739_v62 = vpack.c.bf16 %v511_v54, %v510_v53  ;;  %v2741_v0 = vpack.c.bf16 %v529_v59, %v528_v58  ;;  %v584_v48 = vld [vmem:[#allocation5 + $0xea0] sm:$0xff]  ;;  %v569_v58 = vld [vmem:[#allocation5 + $0xe28] sm:$0xff] }
  0xfc   :  { %1470 = vmatmul.mubr.f32.vlgmr.msra.gmra.mrb[10].mxu1 %v106_v63  ;;  %2722 = vmatprep.subr.bf16.mxu0 %v2721_v2  ;;  %v2771_v63 = vpack.c.bf16 %v543_v57, %v542_v55  ;;  %v513_v2 = vld [vmem:[#allocation5 + $0xc68] sm:$0xff]  ;;  %v2819_v55 = vpack.c.bf16 %v599_v47, %v598_v45  ;;  %v568_v57 = vld [vmem:[#allocation5 + $0xe20] sm:$0xff]  ;;  %v594_v47 = vld [vmem:[#allocation5 + $0xef0] sm:$0xff] }
  0xfd   :  { %2752 = vmatpush3.bf16.msra.mxu1 %v2751_v1  ;;  %1609 = vmatprep.mubr.f32.mxu1 %v111_v13  ;;  %v512_v1 = vld [vmem:[#allocation5 + $0xc60] sm:$0xff]  ;;  %v514_v13 = vld [vmem:[#allocation5 + $0xc70] sm:$0xff] }
  0xfe   :  { %2754 = vmatprep.subr.bf16.mxu1 %v2753_v6  ;;  %v530_v6 = vld [vmem:[#allocation5 + $0xcf0] sm:$0xff]  ;;  %v2743_v10 = vpack.c.bf16 %v513_v2, %v512_v1  ;;  %v600_v59 = vld [vmem:[#allocation5 + $0xf20] sm:$0xff]  ;;  %v619_v1 = vld [vmem:[#allocation5 + $0xfb8] sm:$0xff]  ;;  %v2791_v2 = vpack.c.bf16 %v569_v58, %v568_v57 }
  0xff   :  { %2724 = vmatpush3.bf16.msra.mxu0 %v2723_v14  ;;  %v2745_v12 = vpack.c.bf16 %v531_v7, %v530_v6  ;;  %v515_v14 = vld [vmem:[#allocation5 + $0xc78] sm:$0xff]  ;;  %v2823_v3 = vpack.c.bf16 %v601_v61, %v600_v59  ;;  %v602_v7 = vld [vmem:[#allocation5 + $0xf30] sm:$0xff] }
 0x100   :  { %2726 = vmatprep.subr.bf16.mxu0 %v2725_v16  ;;  %v2777_v16 = vpack.c.bf16 %v563_v9, %v562_v8  ;;  %v2747_v22 = vpack.c.bf16 %v515_v14, %v514_v13  ;;  %v571_v6 = vld [vmem:[#allocation5 + $0xe38] sm:$0xff]  ;;  %v621_v13 = vld [vmem:[#allocation5 + $0xfc8] sm:$0xff] }
 0x101   :  { %2756 = vmatpush3.bf16.msra.mxu1 %v2755_v15  ;;  %v546_v15 = vld [vmem:[#allocation5 + $0xd70] sm:$0xff]  ;;  %v603_v9 = vld [vmem:[#allocation5 + $0xf38] sm:$0xff]  ;;  %v2795_v14 = vpack.c.bf16 %v571_v6, %v570_v5 }
 0x102   :  { %2758 = vmatprep.subr.bf16.mxu1 %v2757_v20  ;;  %v612_v20 = vld [vmem:[#allocation5 + $0xf80] sm:$0xff]  ;;  %v2779_v25 = vpack.c.bf16 %v547_v17, %v546_v15  ;;  %v2827_v15 = vpack.c.bf16 %v603_v9, %v602_v7  ;;  %v579_v61 = vld [vmem:[#allocation5 + $0xe78] sm:$0xff]  ;;  %v82_v6 = vld [vmem:[#allocation2 + $0xf0] sm:$0xff] }
 0x103   :  { %2728 = vmatpush3.bf16.msra.mxu0 %v2727_v26  ;;  %v2781_v26 = vpack.c.bf16 %v581_v19, %v580_v18  ;;  %v2813_v30 = vpack.c.bf16 %v613_v21, %v612_v20  ;;  %v572_v17 = vld [vmem:[#allocation5 + $0xe40] sm:$0xff]  ;;  %v573_v18 = vld [vmem:[#allocation5 + $0xe48] sm:$0xff] }
 0x104   :  { %2730 = vmatprep.subr.bf16.mxu0 %v2729_v28  ;;  %v78_v28 = vld [vmem:[#allocation2 + $0xd0] sm:$0xff]  ;;  %v604_v19 = vld [vmem:[#allocation5 + $0xf40] sm:$0xff]  ;;  %v605_v21 = vld [vmem:[#allocation5 + $0xf48] sm:$0xff] }
 0x105   :  { %2760 = vmatpush3.bf16.msra.mxu1 %v2759_v27  ;;  %v565_v27 = vld [vmem:[#allocation5 + $0xe08] sm:$0xff] }
 0x106   :  { %2762 = vmatprep.subr.bf16.mxu1 %v2761_v32  ;;  %v582_v32 = vld [vmem:[#allocation5 + $0xe90] sm:$0xff] }
 0x107   :  { %2732 = vmatpush3.bf16.msra.mxu0 %v2731_v38  ;;  %v2783_v38 = vpack.c.bf16 %v565_v27, %v564_v24  ;;  %v2785_v42 = vpack.c.bf16 %v583_v33, %v582_v32  ;;  %v622_v24 = vld [vmem:[#allocation5 + $0xfd0] sm:$0xff]  ;;  %v2831_v27 = vpack.c.bf16 %v605_v21, %v604_v19  ;;  %v607_v33 = vld [vmem:[#allocation5 + $0xf58] sm:$0xff] }
 0x108   :  { %2734 = vmatprep.subr.bf16.mxu0 %v2733_v40  ;;  %v83_v40 = vld [vmem:[#allocation2 + $0xf8] sm:$0xff] }
 0x109   :  { %2764 = vmatpush3.bf16.msra.mxu1 %v2763_v39  ;;  %v110_v39 = vmax.f32 %v78_v28, 0.0  ;;  %v115_v53 = vmax.f32 %v83_v40, 0.0 }
 0x10a   :  { %2766 = vmatprep.subr.bf16.mxu1 %v2765_v44  ;;  %v567_v44 = vld [vmem:[#allocation5 + $0xe18] sm:$0xff] }
 0x10b   :  { %2736 = vmatpush3.bf16.msra.mxu0 %v2735_v50  ;;  %v113_v50 = vmax.f32 %v81_v37, 0.0  ;;  %v2787_v54 = vpack.c.bf16 %v567_v44, %v566_v43  ;;  %v625_v37 = vld [vmem:[#allocation5 + $0xfe8] sm:$0xff]  ;;  %v608_v43 = vld [vmem:[#allocation5 + $0xf60] sm:$0xff] }
 0x10c   :  { %2738 = vmatprep.subr.bf16.mxu0 %v2737_v52  ;;  %v617_v52 = vld [vmem:[#allocation5 + $0xfa8] sm:$0xff]  ;;  %v2837_v45 = vpack.c.bf16 %v625_v37, %v624_v36 }
 0x10d   :  { %2768 = vmatpush3.bf16.msra.mxu1 %v2767_v51  ;;  %v616_v51 = vld [vmem:[#allocation5 + $0xfa0] sm:$0xff] }
 0x10e   :  { %2770 = vmatprep.subr.bf16.mxu1 %v2769_v56  ;;  %v2789_v56 = vpack.c.bf16 %v585_v49, %v584_v48  ;;  %v2821_v60 = vpack.c.bf16 %v617_v52, %v616_v51  ;;  %v595_v48 = vld [vmem:[#allocation5 + $0xef8] sm:$0xff]  ;;  %v1772_v49 = vld [vmem:[#allocation7] ss:$0 sm:$0xff]  ;;  %v626_v52 = vld [vmem:[#allocation5 + $0xff0] sm:$0xff] }
 0x10f   :  { %2740 = vmatpush3.bf16.msra.mxu0 %v2739_v62  ;;  %v586_v62 = vld [vmem:[#allocation5 + $0xeb0] sm:$0xff]  ;;  %v2809_v59 = vpack.c.bf16 %v595_v48, %v594_v47 }
 0x110   :  { %2742 = vmatprep.subr.bf16.mxu0 %v2741_v0  ;;  %v618_v0 = vld [vmem:[#allocation5 + $0xfb0] sm:$0xff] }
 0x111   :  { %2772 = vmatpush3.bf16.msra.mxu1 %v2771_v63  ;;  %v587_v63 = vld [vmem:[#allocation5 + $0xeb8] sm:$0xff]  ;;  %v2825_v8 = vpack.c.bf16 %v619_v1, %v618_v0  ;;  %v610_v0 = vld [vmem:[#allocation5 + $0xf70] sm:$0xff] }
 0x112   :  { %2774 = vmatprep.subr.bf16.mxu1 %v2773_v4  ;;  %v2793_v4 = vpack.c.bf16 %v587_v63, %v586_v62  ;;  %v611_v1 = vld [vmem:[#allocation5 + $0xf78] sm:$0xff] }
 0x113   :  { %2744 = vmatpush3.bf16.msra.mxu0 %v2743_v10  ;;  %v588_v10 = vld [vmem:[#allocation5 + $0xec0] sm:$0xff]  ;;  %v2843_v5 = vpack.c.bf16 %v611_v1, %v610_v0 }
 0x114   :  { %2746 = vmatprep.subr.bf16.mxu0 %v2745_v12  ;;  %v620_v12 = vld [vmem:[#allocation5 + $0xfc0] sm:$0xff] }
 0x115   :  { %2776 = vmatpush3.bf16.msra.mxu1 %v2775_v11  ;;  %v589_v11 = vld [vmem:[#allocation5 + $0xec8] sm:$0xff]  ;;  %v2829_v20 = vpack.c.bf16 %v621_v13, %v620_v12 }
 0x116   :  { %2778 = vmatprep.subr.bf16.mxu1 %v2777_v16  ;;  %v2797_v16 = vpack.c.bf16 %v589_v11, %v588_v10 }
 0x117   :  { %2748 = vmatpush3.bf16.msra.mxu0 %v2747_v22  ;;  %v590_v22 = vld [vmem:[#allocation5 + $0xed0] sm:$0xff] }
 0x118   :  { %2782 = vmatprep.subr.bf16.mxu0 %v2781_v26  ;;  %v2799_v26 = vpack.c.bf16 %v573_v18, %v572_v17  ;;  %v2801_v28 = vpack.c.bf16 %v591_v23, %v590_v22 }
 0x119   :  { %2780 = vmatpush3.bf16.msra.mxu1 %v2779_v25  ;;  %v623_v25 = vld [vmem:[#allocation5 + $0xfd8] sm:$0xff] }
 0x11a   :  { %2814 = vmatprep.subr.bf16.mxu1 %v2813_v30  ;;  %1540 = vmatmul.mubr.f32.vlgmr.msra.gmra.mrb[12].mxu0 %v108_v34  ;;  %v575_v30 = vld [vmem:[#allocation5 + $0xe58] sm:$0xff]  ;;  %v2833_v32 = vpack.c.bf16 %v623_v25, %v622_v24  ;;  %v592_v34 = vld [vmem:[#allocation5 + $0xee0] sm:$0xff] }
 0x11b   :  { %2784 = vmatpush3.bf16.msra.mxu0 %v2783_v38  ;;  %1679 = vmatprep.mubr.f32.mxu0 %v113_v50  ;;  %v2803_v38 = vpack.c.bf16 %v575_v30, %v574_v29  ;;  %v2805_v40 = vpack.c.bf16 %v593_v35, %v592_v34 }
 0x11c   :  { %1610 = vmatmul.mubr.f32.vlgmr.msra.gmra.mrb[12].mxu1 %v110_v39  ;;  %2786 = vmatprep.subr.bf16.mxu0 %v2785_v42  ;;  %v2835_v39 = vpack.c.bf16 %v607_v33, %v606_v31  ;;  %v577_v42 = vld [vmem:[#allocation5 + $0xe68] sm:$0xff] }
 0x11d   :  { %2816 = vmatpush3.bf16.msra.mxu1 %v2815_v41  ;;  %1749 = vmatprep.mubr.f32.mxu1 %v115_v53  ;;  %v576_v41 = vld [vmem:[#allocation5 + $0xe60] sm:$0xff]  ;;  %v627_v53 = vld [vmem:[#allocation5 + $0xff8] sm:$0xff] }
 0x11e   :  { %2818 = vmatprep.subr.bf16.mxu1 %v2817_v46  ;;  %v609_v46 = vld [vmem:[#allocation5 + $0xf68] sm:$0xff]  ;;  %v2841_v63 = vpack.c.bf16 %v627_v53, %v626_v52 }
 0x11f   :  { %2788 = vmatpush3.bf16.msra.mxu0 %v2787_v54  ;;  %v2839_v58 = vpack.c.bf16 %v609_v46, %v608_v43 }
 0x120   :  { %2790 = vmatprep.subr.bf16.mxu0 %v2789_v56  ;;  %v2807_v56 = vpack.c.bf16 %v577_v42, %v576_v41 }
 0x121   :  { %2820 = vmatpush3.bf16.msra.mxu1 %v2819_v55 }
 0x122   :  { %2822 = vmatprep.subr.bf16.mxu1 %v2821_v60  ;;  %v578_v60 = vld [vmem:[#allocation5 + $0xe70] sm:$0xff] }
 0x123   :  { %2792 = vmatpush3.bf16.msra.mxu0 %v2791_v2 }
 0x124   :  { %2794 = vmatprep.subr.bf16.mxu0 %v2793_v4  ;;  %v80_v4 = vld [vmem:[#allocation2 + $0xe0] sm:$0xff] }
 0x125   :  { %2824 = vmatpush3.bf16.msra.mxu1 %v2823_v3  ;;  %v2811_v3 = vpack.c.bf16 %v579_v61, %v578_v60  ;;  %v112_v7 = vmax.f32 %v80_v4, 0.0 }
 0x126   :  { %2826 = vmatprep.subr.bf16.mxu1 %v2825_v8  ;;  %v114_v8 = vmax.f32 %v82_v6, 0.0 }
 0x127   :  { %2796 = vmatpush3.bf16.msra.mxu0 %v2795_v14 }
 0x128   :  { %2798 = vmatprep.subr.bf16.mxu0 %v2797_v16 }
 0x129   :  { %2828 = vmatpush3.bf16.msra.mxu1 %v2827_v15 }
 0x12a   :  { %2830 = vmatprep.subr.bf16.mxu1 %v2829_v20 }
 0x12b   :  { %2800 = vmatpush3.bf16.msra.mxu0 %v2799_v26 }
 0x12c   :  { %2802 = vmatprep.subr.bf16.mxu0 %v2801_v28 }
 0x12d   :  { %2832 = vmatpush3.bf16.msra.mxu1 %v2831_v27  ;;  %v1805_v44 = vpop.f32.mrb[0].mxu0 }
 0x12e   :  { %2834 = vmatprep.subr.bf16.mxu1 %v2833_v32  ;;  %v1806_v50 = vpop.f32.mrb[1].mxu0 }
 0x12f   :  { %v1840_v51 = vpop.f32.mrb[0].mxu1  ;;  %v1807_v54 = vadd.f32 %v1806_v50, %v1805_v44  ;;  %2804 = vmatpush3.bf16.msra.mxu0 %v2803_v38 }
 0x130   :  { %v1841_v55 = vpop.f32.mrb[1].mxu1  ;;  %2806 = vmatprep.subr.bf16.mxu0 %v2805_v40 }
 0x131   :  { %v1842_v57 = vadd.f32 %v1841_v55, %v1840_v51  ;;  %2836 = vmatpush3.bf16.msra.mxu1 %v2835_v39  ;;  %v702_v62 = vadd.f32 %v1807_v54, %v1772_v49 }
 0x132   :  { %2838 = vmatprep.subr.bf16.mxu1 %v2837_v45 }
 0x133   :  { %v772_v2 = vadd.f32 %v1842_v57, %v702_v62  ;;  %2808 = vmatpush3.bf16.msra.mxu0 %v2807_v56 }
 0x134   :  { %2810 = vmatprep.subr.bf16.mxu0 %v2809_v59 }
 0x135   :  { %2840 = vmatpush3.bf16.msra.mxu1 %v2839_v58 }
 0x136   :  { %2842 = vmatprep.subr.bf16.mxu1 %v2841_v63 }
 0x137   :  { %2812 = vmatpush3.bf16.msra.mxu0 %v2811_v3 }
 0x139   :  { %2844 = vmatpush3.bf16.msra.mxu1 %v2843_v5 }
 0x13a   :  { %1680 = vmatmul.mubr.f32.vlgmr.msra.gmra.mrb[14].mxu0 %v112_v7 }
 0x13c   :  { %1750 = vmatmul.mubr.f32.vlgmr.msra.gmra.mrb[14].mxu1 %v114_v8 }
 0x14d   :  { %v1875_v9 = vpop.f32.mrb[2].mxu0 }
 0x14e   :  { %v1876_v10 = vpop.f32.mrb[3].mxu0 }
 0x14f   :  { %v1910_v11 = vpop.f32.mrb[2].mxu1  ;;  %v1877_v12 = vadd.f32 %v1876_v10, %v1875_v9 }
 0x150   :  { %v1911_v13 = vpop.f32.mrb[3].mxu1 }
 0x151   :  { %v1912_v14 = vadd.f32 %v1911_v13, %v1910_v11  ;;  %v842_v15 = vadd.f32 %v1877_v12, %v772_v2 }
 0x153   :  { %v912_v16 = vadd.f32 %v1912_v14, %v842_v15 }
 0x16d   :  { %v1945_v17 = vpop.f32.mrb[4].mxu0 }
 0x16e   :  { %v1946_v18 = vpop.f32.mrb[5].mxu0 }
 0x16f   :  { %v1980_v19 = vpop.f32.mrb[4].mxu1  ;;  %v1947_v20 = vadd.f32 %v1946_v18, %v1945_v17 }
 0x170   :  { %v1981_v21 = vpop.f32.mrb[5].mxu1 }
 0x171   :  { %v1982_v22 = vadd.f32 %v1981_v21, %v1980_v19  ;;  %v982_v23 = vadd.f32 %v1947_v20, %v912_v16 }
 0x173   :  { %v1052_v24 = vadd.f32 %v1982_v22, %v982_v23 }
 0x18d   :  { %v2015_v25 = vpop.f32.mrb[6].mxu0 }
 0x18e   :  { %v2016_v26 = vpop.f32.mrb[7].mxu0 }
 0x18f   :  { %v2050_v27 = vpop.f32.mrb[6].mxu1  ;;  %v2017_v28 = vadd.f32 %v2016_v26, %v2015_v25 }
 0x190   :  { %v2051_v29 = vpop.f32.mrb[7].mxu1 }
 0x191   :  { %v2052_v30 = vadd.f32 %v2051_v29, %v2050_v27  ;;  %v1122_v31 = vadd.f32 %v2017_v28, %v1052_v24 }
 0x193   :  { %v1192_v32 = vadd.f32 %v2052_v30, %v1122_v31 }
 0x1ad   :  { %v2085_v33 = vpop.f32.mrb[8].mxu0 }
 0x1ae   :  { %v2086_v34 = vpop.f32.mrb[9].mxu0 }
 0x1af   :  { %v2120_v35 = vpop.f32.mrb[8].mxu1  ;;  %v2087_v36 = vadd.f32 %v2086_v34, %v2085_v33 }
 0x1b0   :  { %v2121_v37 = vpop.f32.mrb[9].mxu1 }
 0x1b1   :  { %v2122_v38 = vadd.f32 %v2121_v37, %v2120_v35  ;;  %v1262_v39 = vadd.f32 %v2087_v36, %v1192_v32 }
 0x1b3   :  { %v1332_v40 = vadd.f32 %v2122_v38, %v1262_v39 }
 0x1cd   :  { %v2155_v41 = vpop.f32.mrb[10].mxu0 }
 0x1ce   :  { %v2156_v42 = vpop.f32.mrb[11].mxu0 }
 0x1cf   :  { %v2190_v43 = vpop.f32.mrb[10].mxu1  ;;  %v2157_v44 = vadd.f32 %v2156_v42, %v2155_v41 }
 0x1d0   :  { %v2191_v45 = vpop.f32.mrb[11].mxu1 }
 0x1d1   :  { %v2192_v46 = vadd.f32 %v2191_v45, %v2190_v43  ;;  %v1402_v47 = vadd.f32 %v2157_v44, %v1332_v40 }
 0x1d3   :  { %v1472_v48 = vadd.f32 %v2192_v46, %v1402_v47 }
 0x1ed   :  { %v2225_v49 = vpop.f32.mrb[12].mxu0 }
 0x1ee   :  { %v2226_v50 = vpop.f32.mrb[13].mxu0 }
 0x1ef   :  { %v2260_v51 = vpop.f32.mrb[12].mxu1  ;;  %v2227_v52 = vadd.f32 %v2226_v50, %v2225_v49 }
 0x1f0   :  { %v2261_v53 = vpop.f32.mrb[13].mxu1 }
 0x1f1   :  { %v2262_v54 = vadd.f32 %v2261_v53, %v2260_v51  ;;  %v1542_v55 = vadd.f32 %v2227_v52, %v1472_v48 }
 0x1f3   :  { %v1612_v56 = vadd.f32 %v2262_v54, %v1542_v55 }
 0x20d   :  { %v2295_v57 = vpop.f32.mrb[14].mxu0 }
 0x20e   :  { %v2296_v58 = vpop.f32.mrb[15].mxu0 }
 0x20f   :  { %v2330_v59 = vpop.f32.mrb[14].mxu1  ;;  %v2297_v60 = vadd.f32 %v2296_v58, %v2295_v57 }
 0x210   :  { %v2331_v61 = vpop.f32.mrb[15].mxu1 }
 0x211   :  { %v2332_v62 = vadd.f32 %v2331_v61, %v2330_v59  ;;  %v1682_v63 = vadd.f32 %v2297_v60, %v1612_v56 }
 0x213   :  { %v1752_v0 = vadd.f32 %v2332_v62, %v1682_v63 }
 0x215   :  { %1755 = vst [vmem:[#allocation8] sm:$0xff] %v1752_v0 }
 0x216   :  { %2928 = shalt.err (!%p2925_p0)
}
 0x217   :  { %s2929_s26 = scalar_lea.hbm %s3022_s3, 128 }
 0x218   :  { %p2930_p1 = scmp.ne.s32.totalorder %s3022_s3, %s2929_s26  ;;  %p2933_p2 = scmp.lt.u32.totalorder %s2929_s26, %s3022_s3 }
 0x21a   :  { %p2935_p3 = pnand %p2933_p2, %p2930_p1 }
 0x21c   :  { %2938 = shalt.err (!%p2935_p3)
}
 0x21d   :  { %1765 = dma.vmem_to_hbm [thread:$0]  %s1763_s22, 128, %s3022_s3, [#allocation4]  }
 0x21e   :  { %2943 = dma.done.wait [#allocation4], 128  }
 0x21f   :  { %2944 = vsyncadd [#allocation4], 4294967168 }
 0x220   :  { %1769 = vsyncpa [#allocation3], 1 }
 0x221   :  { %1770 = vsyncpa [#allocation6], 1 }
 0x222   :  { %1771 = vsyncpa [#allocation4], 1 }

</bundles_post_ra>
